<compile_context>
chip_gen: v6e
topology: v6e:2x2x1
jax: 0.10.0
libtpu: 0.0.40
codegen_flags: <defaults>
</compile_context>

<pallas_src>
import functools

import numpy as np
import jax
import jax.numpy as jnp
from jax.experimental import pallas as pl
from jax.experimental.pallas import tpu as pltpu


def downsampling_kernel(x_ref, csel_ref, w2_ref, b_ref, o_ref, xp_ref, pw_ref,
                        *, K, stride, padding, Ho, Wo):
    # x_ref   : (B, C_in, H, W)      input images, NCHW, whole block in VMEM
    # csel_ref: (W, K*Wo)            0/1 column selection (stride + width pad folded in)
    # w2_ref  : (C_out, K*K*C_in)    conv weight, rows ordered (ki, kj, ci)
    # b_ref   : (C_out, 1)           bias
    # o_ref   : (B, C_out, Ho*Wo)    NCHW output (wrapper reshapes to (B, C_out, Ho, Wo))
    # xp_ref  : (C_in, H+2P, W)      scratch: height-padded image (one batch at a time)
    # pw_ref  : (K*K*C_in, Ho*Wo)    scratch: im2col patch matrix for the 36-deep GEMM
    B, C_in, H, W = x_ref.shape
    s, P = stride, padding

    # Zero once: only the P border rows of xp are ever read as zeros; the
    # interior rows are fully overwritten for every image below.
    xp_ref[...] = jnp.zeros_like(xp_ref)

    csel = csel_ref[...]                       # hoisted, reused for all images
    w2 = w2_ref[...]
    bias = b_ref[...]

    for b in range(B):                         # batch folded into one grid step
        # Height padding: real rows land at [P, P+H); rows outside stay zero.
        xp_ref[:, P:P + H, :] = x_ref[b]

        # --- im2col without a dense gather matrix --------------------------
        # Row/tap selection: strided sublane read (stride = conv stride).
        # Column/tap selection + width zero-padding: one small (W, K*Wo) matmul.
        taps = []
        for ki in range(K):                    # static K loop
            xr = xp_ref[:, pl.ds(ki, Ho, stride=s), :]          # (C_in, Ho, W)
            xr2 = xr.reshape(C_in * Ho, W)                      # aligned sublane merge
            pr = jnp.dot(xr2, csel,
                         preferred_element_type=jnp.float32)    # (C_in*Ho, K*Wo)
            for kj in range(K):
                tap = pr[:, kj * Wo:(kj + 1) * Wo]              # (C_in*Ho, Wo)
                taps.append(tap.reshape(C_in, Ho, Wo))
        pat = jnp.concatenate(taps, axis=0)                     # (K*K*C_in, Ho, Wo)

        # Flatten (Ho, Wo) -> Ho*Wo lanes with Ho static slab stores so the
        # conv contraction below is a single lane-contiguous 36-deep GEMM.
        for ho in range(Ho):
            pw_ref[:, ho * Wo:(ho + 1) * Wo] = pat[:, ho, :]

        # --- one (C_out, 36) x (36, Ho*Wo) GEMM + bias ----------------------
        res = jnp.dot(w2, pw_ref[...],
                      preferred_element_type=jnp.float32) + bias  # (C_out, HQ)
        o_ref[b] = res.astype(o_ref.dtype)


def downsampling_pallas(x, weight, bias, *, stride, padding):
    """Forward of Downsampling (pre/post norm = Identity): Conv2d + bias, NCHW."""
    B, C_in, H, W = x.shape
    C_out, C_in_w, K, K2 = weight.shape
    assert C_in == C_in_w and K == K2
    s, P = stride, padding
    Ho = (H + 2 * P - K) // s + 1
    Wo = (W + 2 * P - K) // s + 1
    HQ = Ho * Wo
    Hp = H + 2 * P

    # Host-built constants (tiny):
    # csel[w, kj*Wo + wo] = 1  iff  w == s*wo + kj - P  and  0 <= w < W
    # (conv stride and zero width-padding folded into the selection; an
    #  out-of-range source column is simply an all-zero csel column).
    csel = np.zeros((W, K * Wo), np.float32)
    for kj in range(K):
        for wo in range(Wo):
            w_src = s * wo + kj - P
            if 0 <= w_src < W:
                csel[w_src, kj * Wo + wo] = 1.0

    # torch weight (C_out, C_in, K, K) -> (C_out, K*K*C_in), columns ordered
    # (ki, kj, ci) to match the in-kernel patch-matrix row order.
    w2 = np.transpose(np.asarray(weight, np.float32), (0, 2, 3, 1))
    w2 = w2.reshape(C_out, K * K * C_in)
    b2 = np.asarray(bias, np.float32).reshape(C_out, 1)

    kernel = functools.partial(downsampling_kernel, K=K, stride=s, padding=P,
                               Ho=Ho, Wo=Wo)

    out = pl.pallas_call(
        kernel,
        out_shape=jax.ShapeDtypeStruct((B, C_out, HQ), x.dtype),
        grid=(1,),
        in_specs=[
            pl.BlockSpec((B, C_in, H, W), lambda i: (0, 0, 0, 0)),
            pl.BlockSpec((W, K * Wo), lambda i: (0, 0)),
            pl.BlockSpec((C_out, K * K * C_in), lambda i: (0, 0)),
            pl.BlockSpec((C_out, 1), lambda i: (0, 0)),
        ],
        out_specs=pl.BlockSpec((B, C_out, HQ), lambda i: (0, 0, 0)),
        scratch_shapes=[
            pltpu.VMEM((C_in, Hp, W), jnp.float32),
            pltpu.VMEM((K * K * C_in, HQ), jnp.float32),
        ],
        compiler_params=pltpu.CompilerParams(
            dimension_semantics=("arbitrary",)),
    )(x, jnp.asarray(csel), jnp.asarray(w2), jnp.asarray(b2))

    # Free (metadata-only) reshape to NCHW (B, C_out, Ho, Wo); no transpose pass.
    return out.reshape(B, C_out, Ho, Wo)


def downsampling_ref(x, weight, bias, *, stride, padding):
    """Pure-JAX reference reproducing the PyTorch forward (Identity norms)."""
    out = jax.lax.conv_general_dilated(
        x, weight, window_strides=(stride, stride),
        padding=((padding, padding), (padding, padding)),
        dimension_numbers=("NCHW", "OIHW", "NCHW"))
    return out + bias[None, :, None, None]


if __name__ == "__main__":
    # Downsampling(inplanes=4, planes=8, kernel_size=3, stride=2, padding=1)
    B, C_in, H, W = 2, 4, 16, 16
    C_out, K, stride, padding = 8, 3, 2, 1

    key = jax.random.PRNGKey(0)
    kx, kw, kb = jax.random.split(key, 3)
    x = jax.random.normal(kx, (B, C_in, H, W), jnp.float32)
    weight = jax.random.normal(kw, (C_out, C_in, K, K), jnp.float32) * 0.1
    bias = jax.random.normal(kb, (C_out,), jnp.float32) * 0.1

    out = jax.block_until_ready(
        downsampling_pallas(x, weight, bias, stride=stride, padding=padding))
    ref = jax.block_until_ready(
        downsampling_ref(x, weight, bias, stride=stride, padding=padding))

    Ho = (H + 2 * padding - K) // stride + 1
    Wo = (W + 2 * padding - K) // stride + 1
    assert out.shape == (B, C_out, Ho, Wo), out.shape
    np.testing.assert_allclose(np.asarray(out), np.asarray(ref),
                               rtol=1e-4, atol=1e-4)
    print("KERNEL_OK")
</pallas_src>

<mosaic_0001>
module attributes {stable_mosaic.version = 11 : i64} {
  func.func @downsampling_kernel(%arg0: i32, %arg1: memref<2x4x16x16xf32, #tpu.memory_space<vmem>>, %arg2: memref<16x24xf32, #tpu.memory_space<vmem>>, %arg3: memref<8x36xf32, #tpu.memory_space<vmem>>, %arg4: memref<8x1xf32, #tpu.memory_space<vmem>>, %arg5: memref<2x8x64xf32, #tpu.memory_space<vmem>>, %arg6: memref<4x18x16xf32, #tpu.memory_space<vmem>>, %arg7: memref<36x64xf32, #tpu.memory_space<vmem>>) attributes {dimension_semantics = [#tpu.dimension_semantics<arbitrary>], iteration_bounds = array<i64: 1>, scalar_prefetch = 0 : i64, scratch_operands = 2 : i64, tpu.core_type = #tpu.core_type<tc>, window_params = [{pipeline_mode = #tpu.pipeline_mode<synchronous>, transform_indices = @transform_0, window_bounds = array<i64: 2, 4, 16, 16>}, {pipeline_mode = #tpu.pipeline_mode<synchronous>, transform_indices = @transform_1, window_bounds = array<i64: 16, 24>}, {pipeline_mode = #tpu.pipeline_mode<synchronous>, transform_indices = @transform_2, window_bounds = array<i64: 8, 36>}, {pipeline_mode = #tpu.pipeline_mode<synchronous>, transform_indices = @transform_3, window_bounds = array<i64: 8, 1>}, {pipeline_mode = #tpu.pipeline_mode<synchronous>, transform_indices = @transform_4, window_bounds = array<i64: 2, 8, 64>}]} {
    %cst = arith.constant 0.000000e+00 : f32
    %0 = vector.broadcast %cst : f32 to vector<4x18x16xf32>
    %c0 = arith.constant 0 : index
    %c0_0 = arith.constant 0 : index
    %c0_1 = arith.constant 0 : index
    %1 = vector.load %arg6[%c0, %c0_0, %c0_1] : memref<4x18x16xf32, #tpu.memory_space<vmem>>, vector<4x18x16xf32>
    tpu.vector_store %arg6[%c0, %c0_0, %c0_1], %0 {strides = array<i32>} : memref<4x18x16xf32, #tpu.memory_space<vmem>>, vector<4x18x16xf32>,
    %c0_2 = arith.constant 0 : index
    %c0_3 = arith.constant 0 : index
    %2 = vector.load %arg2[%c0_2, %c0_3] : memref<16x24xf32, #tpu.memory_space<vmem>>, vector<16x24xf32>
    %c0_4 = arith.constant 0 : index
    %c0_5 = arith.constant 0 : index
    %3 = vector.load %arg3[%c0_4, %c0_5] : memref<8x36xf32, #tpu.memory_space<vmem>>, vector<8x36xf32>
    %c0_6 = arith.constant 0 : index
    %c0_7 = arith.constant 0 : index
    %4 = vector.load %arg4[%c0_6, %c0_7] : memref<8x1xf32, #tpu.memory_space<vmem>>, vector<8x1xf32>
    %c0_8 = arith.constant 0 : index
    %c0_9 = arith.constant 0 : index
    %c0_10 = arith.constant 0 : index
    %c0_11 = arith.constant 0 : index
    %5 = vector.load %arg1[%c0_8, %c0_9, %c0_10, %c0_11] : memref<2x4x16x16xf32, #tpu.memory_space<vmem>>, vector<1x4x16x16xf32>
    %6 = vector.shape_cast %5 : vector<1x4x16x16xf32> to vector<4x16x16xf32>
    %c0_12 = arith.constant 0 : index
    %c1 = arith.constant 1 : index
    %c0_13 = arith.constant 0 : index
    %7 = vector.load %arg6[%c0_12, %c1, %c0_13] : memref<4x18x16xf32, #tpu.memory_space<vmem>>, vector<4x16x16xf32>
    tpu.vector_store %arg6[%c0_12, %c1, %c0_13], %6 {strides = array<i32>} : memref<4x18x16xf32, #tpu.memory_space<vmem>>, vector<4x16x16xf32>,
    %c0_14 = arith.constant 0 : index
    %c0_15 = arith.constant 0 : index
    %c0_16 = arith.constant 0 : index
    %8 = tpu.strided_load %arg6[%c0_14, %c0_15, %c0_16] {strides = array<i32: 1, 2, 1>} : memref<4x18x16xf32, #tpu.memory_space<vmem>>, vector<4x8x16xf32>
    %9 = vector.shape_cast %8 : vector<4x8x16xf32> to vector<32x16xf32>
    %cst_17 = arith.constant dense<0.000000e+00> : vector<32x24xf32>
    %10 = tpu.matmul %9, %2, %cst_17 {dimension_numbers = #tpu.dot_dimension_numbers<[1], [0], [0], [1], [0, 0, 1, 1], [], []>} : vector<32x16xf32>, vector<16x24xf32>, vector<32x24xf32> -> vector<32x24xf32>
    %11 = vector.extract_strided_slice %10 {offsets = [0, 0], sizes = [32, 8], strides = [1, 1]} : vector<32x24xf32> to vector<32x8xf32>
    %12 = vector.shape_cast %11 : vector<32x8xf32> to vector<4x8x8xf32>
    %13 = vector.extract_strided_slice %10 {offsets = [0, 8], sizes = [32, 8], strides = [1, 1]} : vector<32x24xf32> to vector<32x8xf32>
    %14 = vector.shape_cast %13 : vector<32x8xf32> to vector<4x8x8xf32>
    %15 = vector.extract_strided_slice %10 {offsets = [0, 16], sizes = [32, 8], strides = [1, 1]} : vector<32x24xf32> to vector<32x8xf32>
    %16 = vector.shape_cast %15 : vector<32x8xf32> to vector<4x8x8xf32>
    %c0_18 = arith.constant 0 : index
    %c1_19 = arith.constant 1 : index
    %c0_20 = arith.constant 0 : index
    %17 = tpu.strided_load %arg6[%c0_18, %c1_19, %c0_20] {strides = array<i32: 1, 2, 1>} : memref<4x18x16xf32, #tpu.memory_space<vmem>>, vector<4x8x16xf32>
    %18 = vector.shape_cast %17 : vector<4x8x16xf32> to vector<32x16xf32>
    %cst_21 = arith.constant dense<0.000000e+00> : vector<32x24xf32>
    %19 = tpu.matmul %18, %2, %cst_21 {dimension_numbers = #tpu.dot_dimension_numbers<[1], [0], [0], [1], [0, 0, 1, 1], [], []>} : vector<32x16xf32>, vector<16x24xf32>, vector<32x24xf32> -> vector<32x24xf32>
    %20 = vector.extract_strided_slice %19 {offsets = [0, 0], sizes = [32, 8], strides = [1, 1]} : vector<32x24xf32> to vector<32x8xf32>
    %21 = vector.shape_cast %20 : vector<32x8xf32> to vector<4x8x8xf32>
    %22 = vector.extract_strided_slice %19 {offsets = [0, 8], sizes = [32, 8], strides = [1, 1]} : vector<32x24xf32> to vector<32x8xf32>
    %23 = vector.shape_cast %22 : vector<32x8xf32> to vector<4x8x8xf32>
    %24 = vector.extract_strided_slice %19 {offsets = [0, 16], sizes = [32, 8], strides = [1, 1]} : vector<32x24xf32> to vector<32x8xf32>
    %25 = vector.shape_cast %24 : vector<32x8xf32> to vector<4x8x8xf32>
    %c0_22 = arith.constant 0 : index
    %c2 = arith.constant 2 : index
    %c0_23 = arith.constant 0 : index
    %26 = tpu.strided_load %arg6[%c0_22, %c2, %c0_23] {strides = array<i32: 1, 2, 1>} : memref<4x18x16xf32, #tpu.memory_space<vmem>>, vector<4x8x16xf32>
    %27 = vector.shape_cast %26 : vector<4x8x16xf32> to vector<32x16xf32>
    %cst_24 = arith.constant dense<0.000000e+00> : vector<32x24xf32>
    %28 = tpu.matmul %27, %2, %cst_24 {dimension_numbers = #tpu.dot_dimension_numbers<[1], [0], [0], [1], [0, 0, 1, 1], [], []>} : vector<32x16xf32>, vector<16x24xf32>, vector<32x24xf32> -> vector<32x24xf32>
    %29 = vector.extract_strided_slice %28 {offsets = [0, 0], sizes = [32, 8], strides = [1, 1]} : vector<32x24xf32> to vector<32x8xf32>
    %30 = vector.shape_cast %29 : vector<32x8xf32> to vector<4x8x8xf32>
    %31 = vector.extract_strided_slice %28 {offsets = [0, 8], sizes = [32, 8], strides = [1, 1]} : vector<32x24xf32> to vector<32x8xf32>
    %32 = vector.shape_cast %31 : vector<32x8xf32> to vector<4x8x8xf32>
    %33 = vector.extract_strided_slice %28 {offsets = [0, 16], sizes = [32, 8], strides = [1, 1]} : vector<32x24xf32> to vector<32x8xf32>
    %34 = vector.shape_cast %33 : vector<32x8xf32> to vector<4x8x8xf32>
    %35 = tpu.concatenate %12, %14, %16, %21, %23, %25, %30, %32, %34 in 0 : vector<4x8x8xf32>, vector<4x8x8xf32>, vector<4x8x8xf32>, vector<4x8x8xf32>, vector<4x8x8xf32>, vector<4x8x8xf32>, vector<4x8x8xf32>, vector<4x8x8xf32>, vector<4x8x8xf32> -> vector<36x8x8xf32>
    %36 = vector.extract_strided_slice %35 {offsets = [0, 0, 0], sizes = [36, 1, 8], strides = [1, 1, 1]} : vector<36x8x8xf32> to vector<36x1x8xf32>
    %37 = vector.shape_cast %36 : vector<36x1x8xf32> to vector<36x8xf32>
    %c0_25 = arith.constant 0 : index
    %c0_26 = arith.constant 0 : index
    %38 = vector.load %arg7[%c0_25, %c0_26] : memref<36x64xf32, #tpu.memory_space<vmem>>, vector<36x8xf32>
    tpu.vector_store %arg7[%c0_25, %c0_26], %37 {strides = array<i32>} : memref<36x64xf32, #tpu.memory_space<vmem>>, vector<36x8xf32>,
    %39 = vector.extract_strided_slice %35 {offsets = [0, 1, 0], sizes = [36, 1, 8], strides = [1, 1, 1]} : vector<36x8x8xf32> to vector<36x1x8xf32>
    %40 = vector.shape_cast %39 : vector<36x1x8xf32> to vector<36x8xf32>
    %c0_27 = arith.constant 0 : index
    %c8 = arith.constant 8 : index
    %41 = vector.load %arg7[%c0_27, %c8] : memref<36x64xf32, #tpu.memory_space<vmem>>, vector<36x8xf32>
    tpu.vector_store %arg7[%c0_27, %c8], %40 {strides = array<i32>} : memref<36x64xf32, #tpu.memory_space<vmem>>, vector<36x8xf32>,
    %42 = vector.extract_strided_slice %35 {offsets = [0, 2, 0], sizes = [36, 1, 8], strides = [1, 1, 1]} : vector<36x8x8xf32> to vector<36x1x8xf32>
    %43 = vector.shape_cast %42 : vector<36x1x8xf32> to vector<36x8xf32>
    %c0_28 = arith.constant 0 : index
    %c16 = arith.constant 16 : index
    %44 = vector.load %arg7[%c0_28, %c16] : memref<36x64xf32, #tpu.memory_space<vmem>>, vector<36x8xf32>
    tpu.vector_store %arg7[%c0_28, %c16], %43 {strides = array<i32>} : memref<36x64xf32, #tpu.memory_space<vmem>>, vector<36x8xf32>,
    %45 = vector.extract_strided_slice %35 {offsets = [0, 3, 0], sizes = [36, 1, 8], strides = [1, 1, 1]} : vector<36x8x8xf32> to vector<36x1x8xf32>
    %46 = vector.shape_cast %45 : vector<36x1x8xf32> to vector<36x8xf32>
    %c0_29 = arith.constant 0 : index
    %c24 = arith.constant 24 : index
    %47 = vector.load %arg7[%c0_29, %c24] : memref<36x64xf32, #tpu.memory_space<vmem>>, vector<36x8xf32>
    tpu.vector_store %arg7[%c0_29, %c24], %46 {strides = array<i32>} : memref<36x64xf32, #tpu.memory_space<vmem>>, vector<36x8xf32>,
    %48 = vector.extract_strided_slice %35 {offsets = [0, 4, 0], sizes = [36, 1, 8], strides = [1, 1, 1]} : vector<36x8x8xf32> to vector<36x1x8xf32>
    %49 = vector.shape_cast %48 : vector<36x1x8xf32> to vector<36x8xf32>
    %c0_30 = arith.constant 0 : index
    %c32 = arith.constant 32 : index
    %50 = vector.load %arg7[%c0_30, %c32] : memref<36x64xf32, #tpu.memory_space<vmem>>, vector<36x8xf32>
    tpu.vector_store %arg7[%c0_30, %c32], %49 {strides = array<i32>} : memref<36x64xf32, #tpu.memory_space<vmem>>, vector<36x8xf32>,
    %51 = vector.extract_strided_slice %35 {offsets = [0, 5, 0], sizes = [36, 1, 8], strides = [1, 1, 1]} : vector<36x8x8xf32> to vector<36x1x8xf32>
    %52 = vector.shape_cast %51 : vector<36x1x8xf32> to vector<36x8xf32>
    %c0_31 = arith.constant 0 : index
    %c40 = arith.constant 40 : index
    %53 = vector.load %arg7[%c0_31, %c40] : memref<36x64xf32, #tpu.memory_space<vmem>>, vector<36x8xf32>
    tpu.vector_store %arg7[%c0_31, %c40], %52 {strides = array<i32>} : memref<36x64xf32, #tpu.memory_space<vmem>>, vector<36x8xf32>,
    %54 = vector.extract_strided_slice %35 {offsets = [0, 6, 0], sizes = [36, 1, 8], strides = [1, 1, 1]} : vector<36x8x8xf32> to vector<36x1x8xf32>
    %55 = vector.shape_cast %54 : vector<36x1x8xf32> to vector<36x8xf32>
    %c0_32 = arith.constant 0 : index
    %c48 = arith.constant 48 : index
    %56 = vector.load %arg7[%c0_32, %c48] : memref<36x64xf32, #tpu.memory_space<vmem>>, vector<36x8xf32>
    tpu.vector_store %arg7[%c0_32, %c48], %55 {strides = array<i32>} : memref<36x64xf32, #tpu.memory_space<vmem>>, vector<36x8xf32>,
    %57 = vector.extract_strided_slice %35 {offsets = [0, 7, 0], sizes = [36, 1, 8], strides = [1, 1, 1]} : vector<36x8x8xf32> to vector<36x1x8xf32>
    %58 = vector.shape_cast %57 : vector<36x1x8xf32> to vector<36x8xf32>
    %c0_33 = arith.constant 0 : index
    %c56 = arith.constant 56 : index
    %59 = vector.load %arg7[%c0_33, %c56] : memref<36x64xf32, #tpu.memory_space<vmem>>, vector<36x8xf32>
    tpu.vector_store %arg7[%c0_33, %c56], %58 {strides = array<i32>} : memref<36x64xf32, #tpu.memory_space<vmem>>, vector<36x8xf32>,
    %c0_34 = arith.constant 0 : index
    %c0_35 = arith.constant 0 : index
    %60 = vector.load %arg7[%c0_34, %c0_35] : memref<36x64xf32, #tpu.memory_space<vmem>>, vector<36x64xf32>
    %cst_36 = arith.constant dense<0.000000e+00> : vector<8x64xf32>
    %61 = tpu.matmul %3, %60, %cst_36 {dimension_numbers = #tpu.dot_dimension_numbers<[1], [0], [0], [1], [0, 0, 1, 1], [], []>} : vector<8x36xf32>, vector<36x64xf32>, vector<8x64xf32> -> vector<8x64xf32>
    %62 = vector.broadcast %4 : vector<8x1xf32> to vector<8x64xf32>
    %63 = arith.addf %61, %62 : vector<8x64xf32>
    %c0_37 = arith.constant 0 : index
    %c0_38 = arith.constant 0 : index
    %c0_39 = arith.constant 0 : index
    %64 = vector.load %arg5[%c0_37, %c0_38, %c0_39] : memref<2x8x64xf32, #tpu.memory_space<vmem>>, vector<1x8x64xf32>
    %65 = vector.shape_cast %64 : vector<1x8x64xf32> to vector<8x64xf32>
    %66 = vector.shape_cast %63 : vector<8x64xf32> to vector<1x8x64xf32>
    tpu.vector_store %arg5[%c0_37, %c0_38, %c0_39], %66 {strides = array<i32>} : memref<2x8x64xf32, #tpu.memory_space<vmem>>, vector<1x8x64xf32>,
    %c1_40 = arith.constant 1 : index
    %c0_41 = arith.constant 0 : index
    %c0_42 = arith.constant 0 : index
    %c0_43 = arith.constant 0 : index
    %67 = vector.load %arg1[%c1_40, %c0_41, %c0_42, %c0_43] : memref<2x4x16x16xf32, #tpu.memory_space<vmem>>, vector<1x4x16x16xf32>
    %68 = vector.shape_cast %67 : vector<1x4x16x16xf32> to vector<4x16x16xf32>
    %c0_44 = arith.constant 0 : index
    %c1_45 = arith.constant 1 : index
    %c0_46 = arith.constant 0 : index
    %69 = vector.load %arg6[%c0_44, %c1_45, %c0_46] : memref<4x18x16xf32, #tpu.memory_space<vmem>>, vector<4x16x16xf32>
    tpu.vector_store %arg6[%c0_44, %c1_45, %c0_46], %68 {strides = array<i32>} : memref<4x18x16xf32, #tpu.memory_space<vmem>>, vector<4x16x16xf32>,
    %c0_47 = arith.constant 0 : index
    %c0_48 = arith.constant 0 : index
    %c0_49 = arith.constant 0 : index
    %70 = tpu.strided_load %arg6[%c0_47, %c0_48, %c0_49] {strides = array<i32: 1, 2, 1>} : memref<4x18x16xf32, #tpu.memory_space<vmem>>, vector<4x8x16xf32>
    %71 = vector.shape_cast %70 : vector<4x8x16xf32> to vector<32x16xf32>
    %cst_50 = arith.constant dense<0.000000e+00> : vector<32x24xf32>
    %72 = tpu.matmul %71, %2, %cst_50 {dimension_numbers = #tpu.dot_dimension_numbers<[1], [0], [0], [1], [0, 0, 1, 1], [], []>} : vector<32x16xf32>, vector<16x24xf32>, vector<32x24xf32> -> vector<32x24xf32>
    %73 = vector.extract_strided_slice %72 {offsets = [0, 0], sizes = [32, 8], strides = [1, 1]} : vector<32x24xf32> to vector<32x8xf32>
    %74 = vector.shape_cast %73 : vector<32x8xf32> to vector<4x8x8xf32>
    %75 = vector.extract_strided_slice %72 {offsets = [0, 8], sizes = [32, 8], strides = [1, 1]} : vector<32x24xf32> to vector<32x8xf32>
    %76 = vector.shape_cast %75 : vector<32x8xf32> to vector<4x8x8xf32>
    %77 = vector.extract_strided_slice %72 {offsets = [0, 16], sizes = [32, 8], strides = [1, 1]} : vector<32x24xf32> to vector<32x8xf32>
    %78 = vector.shape_cast %77 : vector<32x8xf32> to vector<4x8x8xf32>
    %c0_51 = arith.constant 0 : index
    %c1_52 = arith.constant 1 : index
    %c0_53 = arith.constant 0 : index
    %79 = tpu.strided_load %arg6[%c0_51, %c1_52, %c0_53] {strides = array<i32: 1, 2, 1>} : memref<4x18x16xf32, #tpu.memory_space<vmem>>, vector<4x8x16xf32>
    %80 = vector.shape_cast %79 : vector<4x8x16xf32> to vector<32x16xf32>
    %cst_54 = arith.constant dense<0.000000e+00> : vector<32x24xf32>
    %81 = tpu.matmul %80, %2, %cst_54 {dimension_numbers = #tpu.dot_dimension_numbers<[1], [0], [0], [1], [0, 0, 1, 1], [], []>} : vector<32x16xf32>, vector<16x24xf32>, vector<32x24xf32> -> vector<32x24xf32>
    %82 = vector.extract_strided_slice %81 {offsets = [0, 0], sizes = [32, 8], strides = [1, 1]} : vector<32x24xf32> to vector<32x8xf32>
    %83 = vector.shape_cast %82 : vector<32x8xf32> to vector<4x8x8xf32>
    %84 = vector.extract_strided_slice %81 {offsets = [0, 8], sizes = [32, 8], strides = [1, 1]} : vector<32x24xf32> to vector<32x8xf32>
    %85 = vector.shape_cast %84 : vector<32x8xf32> to vector<4x8x8xf32>
    %86 = vector.extract_strided_slice %81 {offsets = [0, 16], sizes = [32, 8], strides = [1, 1]} : vector<32x24xf32> to vector<32x8xf32>
    %87 = vector.shape_cast %86 : vector<32x8xf32> to vector<4x8x8xf32>
    %c0_55 = arith.constant 0 : index
    %c2_56 = arith.constant 2 : index
    %c0_57 = arith.constant 0 : index
    %88 = tpu.strided_load %arg6[%c0_55, %c2_56, %c0_57] {strides = array<i32: 1, 2, 1>} : memref<4x18x16xf32, #tpu.memory_space<vmem>>, vector<4x8x16xf32>
    %89 = vector.shape_cast %88 : vector<4x8x16xf32> to vector<32x16xf32>
    %cst_58 = arith.constant dense<0.000000e+00> : vector<32x24xf32>
    %90 = tpu.matmul %89, %2, %cst_58 {dimension_numbers = #tpu.dot_dimension_numbers<[1], [0], [0], [1], [0, 0, 1, 1], [], []>} : vector<32x16xf32>, vector<16x24xf32>, vector<32x24xf32> -> vector<32x24xf32>
    %91 = vector.extract_strided_slice %90 {offsets = [0, 0], sizes = [32, 8], strides = [1, 1]} : vector<32x24xf32> to vector<32x8xf32>
    %92 = vector.shape_cast %91 : vector<32x8xf32> to vector<4x8x8xf32>
    %93 = vector.extract_strided_slice %90 {offsets = [0, 8], sizes = [32, 8], strides = [1, 1]} : vector<32x24xf32> to vector<32x8xf32>
    %94 = vector.shape_cast %93 : vector<32x8xf32> to vector<4x8x8xf32>
    %95 = vector.extract_strided_slice %90 {offsets = [0, 16], sizes = [32, 8], strides = [1, 1]} : vector<32x24xf32> to vector<32x8xf32>
    %96 = vector.shape_cast %95 : vector<32x8xf32> to vector<4x8x8xf32>
    %97 = tpu.concatenate %74, %76, %78, %83, %85, %87, %92, %94, %96 in 0 : vector<4x8x8xf32>, vector<4x8x8xf32>, vector<4x8x8xf32>, vector<4x8x8xf32>, vector<4x8x8xf32>, vector<4x8x8xf32>, vector<4x8x8xf32>, vector<4x8x8xf32>, vector<4x8x8xf32> -> vector<36x8x8xf32>
    %98 = vector.extract_strided_slice %97 {offsets = [0, 0, 0], sizes = [36, 1, 8], strides = [1, 1, 1]} : vector<36x8x8xf32> to vector<36x1x8xf32>
    %99 = vector.shape_cast %98 : vector<36x1x8xf32> to vector<36x8xf32>
    %c0_59 = arith.constant 0 : index
    %c0_60 = arith.constant 0 : index
    %100 = vector.load %arg7[%c0_59, %c0_60] : memref<36x64xf32, #tpu.memory_space<vmem>>, vector<36x8xf32>
    tpu.vector_store %arg7[%c0_59, %c0_60], %99 {strides = array<i32>} : memref<36x64xf32, #tpu.memory_space<vmem>>, vector<36x8xf32>,
    %101 = vector.extract_strided_slice %97 {offsets = [0, 1, 0], sizes = [36, 1, 8], strides = [1, 1, 1]} : vector<36x8x8xf32> to vector<36x1x8xf32>
    %102 = vector.shape_cast %101 : vector<36x1x8xf32> to vector<36x8xf32>
    %c0_61 = arith.constant 0 : index
    %c8_62 = arith.constant 8 : index
    %103 = vector.load %arg7[%c0_61, %c8_62] : memref<36x64xf32, #tpu.memory_space<vmem>>, vector<36x8xf32>
    tpu.vector_store %arg7[%c0_61, %c8_62], %102 {strides = array<i32>} : memref<36x64xf32, #tpu.memory_space<vmem>>, vector<36x8xf32>,
    %104 = vector.extract_strided_slice %97 {offsets = [0, 2, 0], sizes = [36, 1, 8], strides = [1, 1, 1]} : vector<36x8x8xf32> to vector<36x1x8xf32>
    %105 = vector.shape_cast %104 : vector<36x1x8xf32> to vector<36x8xf32>
    %c0_63 = arith.constant 0 : index
    %c16_64 = arith.constant 16 : index
    %106 = vector.load %arg7[%c0_63, %c16_64] : memref<36x64xf32, #tpu.memory_space<vmem>>, vector<36x8xf32>
    tpu.vector_store %arg7[%c0_63, %c16_64], %105 {strides = array<i32>} : memref<36x64xf32, #tpu.memory_space<vmem>>, vector<36x8xf32>,
    %107 = vector.extract_strided_slice %97 {offsets = [0, 3, 0], sizes = [36, 1, 8], strides = [1, 1, 1]} : vector<36x8x8xf32> to vector<36x1x8xf32>
    %108 = vector.shape_cast %107 : vector<36x1x8xf32> to vector<36x8xf32>
    %c0_65 = arith.constant 0 : index
    %c24_66 = arith.constant 24 : index
    %109 = vector.load %arg7[%c0_65, %c24_66] : memref<36x64xf32, #tpu.memory_space<vmem>>, vector<36x8xf32>
    tpu.vector_store %arg7[%c0_65, %c24_66], %108 {strides = array<i32>} : memref<36x64xf32, #tpu.memory_space<vmem>>, vector<36x8xf32>,
    %110 = vector.extract_strided_slice %97 {offsets = [0, 4, 0], sizes = [36, 1, 8], strides = [1, 1, 1]} : vector<36x8x8xf32> to vector<36x1x8xf32>
    %111 = vector.shape_cast %110 : vector<36x1x8xf32> to vector<36x8xf32>
    %c0_67 = arith.constant 0 : index
    %c32_68 = arith.constant 32 : index
    %112 = vector.load %arg7[%c0_67, %c32_68] : memref<36x64xf32, #tpu.memory_space<vmem>>, vector<36x8xf32>
    tpu.vector_store %arg7[%c0_67, %c32_68], %111 {strides = array<i32>} : memref<36x64xf32, #tpu.memory_space<vmem>>, vector<36x8xf32>,
    %113 = vector.extract_strided_slice %97 {offsets = [0, 5, 0], sizes = [36, 1, 8], strides = [1, 1, 1]} : vector<36x8x8xf32> to vector<36x1x8xf32>
    %114 = vector.shape_cast %113 : vector<36x1x8xf32> to vector<36x8xf32>
    %c0_69 = arith.constant 0 : index
    %c40_70 = arith.constant 40 : index
    %115 = vector.load %arg7[%c0_69, %c40_70] : memref<36x64xf32, #tpu.memory_space<vmem>>, vector<36x8xf32>
    tpu.vector_store %arg7[%c0_69, %c40_70], %114 {strides = array<i32>} : memref<36x64xf32, #tpu.memory_space<vmem>>, vector<36x8xf32>,
    %116 = vector.extract_strided_slice %97 {offsets = [0, 6, 0], sizes = [36, 1, 8], strides = [1, 1, 1]} : vector<36x8x8xf32> to vector<36x1x8xf32>
    %117 = vector.shape_cast %116 : vector<36x1x8xf32> to vector<36x8xf32>
    %c0_71 = arith.constant 0 : index
    %c48_72 = arith.constant 48 : index
    %118 = vector.load %arg7[%c0_71, %c48_72] : memref<36x64xf32, #tpu.memory_space<vmem>>, vector<36x8xf32>
    tpu.vector_store %arg7[%c0_71, %c48_72], %117 {strides = array<i32>} : memref<36x64xf32, #tpu.memory_space<vmem>>, vector<36x8xf32>,
    %119 = vector.extract_strided_slice %97 {offsets = [0, 7, 0], sizes = [36, 1, 8], strides = [1, 1, 1]} : vector<36x8x8xf32> to vector<36x1x8xf32>
    %120 = vector.shape_cast %119 : vector<36x1x8xf32> to vector<36x8xf32>
    %c0_73 = arith.constant 0 : index
    %c56_74 = arith.constant 56 : index
    %121 = vector.load %arg7[%c0_73, %c56_74] : memref<36x64xf32, #tpu.memory_space<vmem>>, vector<36x8xf32>
    tpu.vector_store %arg7[%c0_73, %c56_74], %120 {strides = array<i32>} : memref<36x64xf32, #tpu.memory_space<vmem>>, vector<36x8xf32>,
    %c0_75 = arith.constant 0 : index
    %c0_76 = arith.constant 0 : index
    %122 = vector.load %arg7[%c0_75, %c0_76] : memref<36x64xf32, #tpu.memory_space<vmem>>, vector<36x64xf32>
    %cst_77 = arith.constant dense<0.000000e+00> : vector<8x64xf32>
    %123 = tpu.matmul %3, %122, %cst_77 {dimension_numbers = #tpu.dot_dimension_numbers<[1], [0], [0], [1], [0, 0, 1, 1], [], []>} : vector<8x36xf32>, vector<36x64xf32>, vector<8x64xf32> -> vector<8x64xf32>
    %124 = vector.broadcast %4 : vector<8x1xf32> to vector<8x64xf32>
    %125 = arith.addf %123, %124 : vector<8x64xf32>
    %c1_78 = arith.constant 1 : index
    %c0_79 = arith.constant 0 : index
    %c0_80 = arith.constant 0 : index
    %126 = vector.load %arg5[%c1_78, %c0_79, %c0_80] : memref<2x8x64xf32, #tpu.memory_space<vmem>>, vector<1x8x64xf32>
    %127 = vector.shape_cast %126 : vector<1x8x64xf32> to vector<8x64xf32>
    %128 = vector.shape_cast %125 : vector<8x64xf32> to vector<1x8x64xf32>
    tpu.vector_store %arg5[%c1_78, %c0_79, %c0_80], %128 {strides = array<i32>} : memref<2x8x64xf32, #tpu.memory_space<vmem>>, vector<1x8x64xf32>,
    return
  }
  func.func @transform_0(%arg0: i32) -> (i32, i32, i32, i32) {
    %c0_i32 = arith.constant 0 : i32
    %c0_i32_0 = arith.constant 0 : i32
    %c0_i32_1 = arith.constant 0 : i32
    %c0_i32_2 = arith.constant 0 : i32
    %c0_i32_3 = arith.constant 0 : i32
    return %c0_i32, %c0_i32_0, %c0_i32_1, %c0_i32_2 : i32, i32, i32, i32
  }
  func.func @transform_1(%arg0: i32) -> (i32, i32) {
    %c0_i32 = arith.constant 0 : i32
    %c0_i32_0 = arith.constant 0 : i32
    %c0_i32_1 = arith.constant 0 : i32
    return %c0_i32, %c0_i32_0 : i32, i32
  }
  func.func @transform_2(%arg0: i32) -> (i32, i32) {
    %c0_i32 = arith.constant 0 : i32
    %c0_i32_0 = arith.constant 0 : i32
    %c0_i32_1 = arith.constant 0 : i32
    return %c0_i32, %c0_i32_0 : i32, i32
  }
  func.func @transform_3(%arg0: i32) -> (i32, i32) {
    %c0_i32 = arith.constant 0 : i32
    %c0_i32_0 = arith.constant 0 : i32
    %c0_i32_1 = arith.constant 0 : i32
    return %c0_i32, %c0_i32_0 : i32, i32
  }
  func.func @transform_4(%arg0: i32) -> (i32, i32, i32) {
    %c0_i32 = arith.constant 0 : i32
    %c0_i32_0 = arith.constant 0 : i32
    %c0_i32_1 = arith.constant 0 : i32
    %c0_i32_2 = arith.constant 0 : i32
    return %c0_i32, %c0_i32_0, %c0_i32_1 : i32, i32, i32
  }
}

</mosaic_0001>

<bundles_post_ra>
// kernel: tpu_custom_call.1
= control target key start
LH: loop header
LB: loop body
LE: loop exit
PB: predicated region body
PF: predicated region fallthrough
CT: control target
= control target key end

     0   :  { %9 = vsyncpa [#allocation5], 0  ;;  %s3881_s0 = inlined_call_operand.hbm [shape: f32[2,4,16,16], index: 0, kind: input, shape index: {}]   ;;  %s3882_s1 = inlined_call_operand.hbm [shape: f32[16,24], index: 1, kind: input, shape index: {}]   ;;  %s3883_s2 = inlined_call_operand.vmem [shape: f32[8,36], index: 2, kind: input, shape index: {}]   ;;  %s3884_s3 = inlined_call_operand.vmem [shape: f32[8,1], index: 3, kind: input, shape index: {}]   ;;  %s3885_s4 = inlined_call_operand.hbm [shape: f32[2,8,64], index: 4, kind: output, shape index: {}]  }
   0x1   :  { %10 = vsyncpa [#allocation8], 0 }
   0x2   :  { %11 = vsyncpa [#allocation6], 0  ;;  %s2174_s15 = smov [#allocation4]  }
   0x3   :  { %s17_s16 = sshll.u32 %s2174_s15, 4  ;;  %s18_s16 = int_to_ptr.vmem [resolvable:$true] %s17_s16 }
   0x4   :  { %s2116_s17 = scalar_lea.vmem %s18_s16, 2048  ;;  %p2121_p1 = scmp.lt.s32.totalorder %s18_s16, %s18_s16 }
   0x5   :  { %p2117_p0 = scmp.ne.s32.totalorder %s18_s16, %s2116_s17  ;;  %p2122_p2 = scmp.lt.s32.totalorder %s2116_s17, %s2116_s17 }
   0x7   :  { %p2123_p3 = por %p2122_p2, %p2121_p1 }
   0x9   :  { %p2124_p4 = pnand %p2123_p3, %p2117_p0 }
   0xb   :  { %2127 = shalt.err (!%p2124_p4)
}
   0xc   :  { %s2175_s18 = smov 128   ;;  %s2176_s19 = smov 8  }
   0xd   :  { %23 = dma.hbm_to_vmem [thread:$0]  %s3881_s0, 2048, %s18_s16, [#allocation5], %s2175_s18, %s2175_s18, %s2176_s19  }
   0xe   :  { %s2177_s22 = smov [#allocation7]  }
   0xf   :  { %s29_s23 = sshll.u32 %s2177_s22, 4  ;;  %s30_s23 = int_to_ptr.vmem [resolvable:$true] %s29_s23 }
  0x10   :  { %s2136_s24 = scalar_lea.vmem %s30_s23, 256  ;;  %p2141_p6 = scmp.lt.s32.totalorder %s30_s23, %s30_s23 }
  0x11   :  { %p2137_p5 = scmp.ne.s32.totalorder %s30_s23, %s2136_s24  ;;  %p2142_p7 = scmp.lt.s32.totalorder %s2136_s24, %s2136_s24 }
  0x13   :  { %p2143_p8 = por %p2142_p7, %p2141_p6 }
  0x15   :  { %p2144_p9 = pnand %p2143_p8, %p2137_p5 }
  0x17   :  { %2147 = shalt.err (!%p2144_p9)
}
  0x18   :  { %35 = dma.hbm_to_vmem [thread:$0]  %s3882_s1, 256, %s30_s23, [#allocation8], %s2175_s18, %s2175_s18, %s2176_s19  }
  0x19   :  { %2168 = dma.done.wait [#allocation5], 2048  }
  0x1a   :  { %2169 = vsyncadd [#allocation5], 4294965248 }
  0x1b   :  { %2170 = dma.done.wait [#allocation8], 256  }
  0x1c   :  { %2171 = vsyncadd [#allocation8], 4294967040  ;;  %vm46_vm0 = vcmask 130048   ;;  %vm49_vm1 = vcmask 123904   ;;  %v2178_v0 = vmov 0.0   ;;  %v2247_v1 = vld [vmem:[#allocation7 + $0x8] sm:$0xff] }
  0x1d   :  { %47 = vst.msk [vmem:[#allocation2] sm:$0xff] %vm46_vm0, %v2178_v0  ;;  %48 = vst.msk [vmem:[#allocation2 + $0x8] sm:$0xff] %vm46_vm0, %v2178_v0  ;;  %v2249_v2 = vld [vmem:[#allocation7] sm:$0xff]  ;;  %2003 = vmatprep.subr.mxu0 %v2247_v1  ;;  %2013 = vmatprep.subr.mxu1 %v2247_v1  ;;  %v65_v4 = vld [vmem:[#allocation4 + $0x8] sm:$0xff]  ;;  %s2179_s0 = smov 120   ;;  %s2180_s1 = smov 112  }
  0x1e   :  { %50 = vst.msk [vmem:[#allocation2 + $0x10] sm:$0x3] %vm49_vm1, %v2178_v0  ;;  %53 = vst.msk [vmem:[#allocation2 + $0x28] sm:$0x3] %vm49_vm1, %v2178_v0  ;;  %v64_v3 = vld [vmem:[#allocation4] sm:$0xff]  ;;  %v66_v5 = vld [vmem:[#allocation4 + $0x10] sm:$0xff]  ;;  %2004 = vmatpush3.msra.mxu0 %v2247_v1  ;;  %2014 = vmatpush3.msra.mxu1 %v2247_v1 }
  0x1f   :  { %51 = vst.msk [vmem:[#allocation2 + $0x18] sm:$0xff] %vm46_vm0, %v2178_v0  ;;  %52 = vst.msk [vmem:[#allocation2 + $0x20] sm:$0xff] %vm46_vm0, %v2178_v0  ;;  %v67_v6 = vld [vmem:[#allocation4 + $0x18] sm:$0xff]  ;;  %v68_v7 = vld [vmem:[#allocation4 + $0x20] sm:$0xff]  ;;  %2005 = vmatprep.subr.mxu0 %v2249_v2  ;;  %2015 = vmatprep.subr.mxu1 %v2249_v2  ;;  %vm455_vm2 = vcmask 1041409   ;;  %vm464_vm3 = vcmask 1044484  }
  0x20   :  { %54 = vst.msk [vmem:[#allocation2 + $0x30] sm:$0xff] %vm46_vm0, %v2178_v0  ;;  %55 = vst.msk [vmem:[#allocation2 + $0x38] sm:$0xff] %vm46_vm0, %v2178_v0  ;;  %v69_v8 = vld [vmem:[#allocation4 + $0x28] sm:$0xff]  ;;  %v70_v9 = vld [vmem:[#allocation4 + $0x30] sm:$0xff]  ;;  %2006 = vmatpush3.msra.mxu0 %v2249_v2  ;;  %2016 = vmatpush3.msra.mxu1 %v2249_v2  ;;  %vm461_vm4 = vcmask 1043459   ;;  %vm458_vm5 = vcmask 1042434  }
  0x21   :  { %56 = vst.msk [vmem:[#allocation2 + $0x40] sm:$0x3] %vm49_vm1, %v2178_v0  ;;  %59 = vst.msk [vmem:[#allocation2 + $0x58] sm:$0x3] %vm49_vm1, %v2178_v0  ;;  %v71_v10 = vld [vmem:[#allocation4 + $0x38] sm:$0xff]  ;;  %2023 = vmatprep.subr.mxu0 %v2247_v1  ;;  %2033 = vmatprep.subr.mxu1 %v2178_v0  ;;  %v1012_v11 = vld [vmem:[#allocation4 + $0x40] sm:$0xff] }
  0x22   :  { %57 = vst.msk [vmem:[#allocation2 + $0x48] sm:$0xff] %vm46_vm0, %v2178_v0  ;;  %58 = vst.msk [vmem:[#allocation2 + $0x50] sm:$0xff] %vm46_vm0, %v2178_v0  ;;  %v1013_v12 = vld [vmem:[#allocation4 + $0x48] sm:$0xff]  ;;  %v1014_v13 = vld [vmem:[#allocation4 + $0x50] sm:$0xff]  ;;  %vm467_vm6 = vcmask 1045509   ;;  %vm3897_vm7 = vcmask 1046534  }
  0x23   :  { %72 = vst.msk [vmem:[#allocation2 + $0x1] sm:$0xff] %vm46_vm0, %v64_v3  ;;  %73 = vst.msk [vmem:[#allocation2 + $0x9] sm:$0xff] %vm46_vm0, %v65_v4  ;;  %v1015_v14 = vld [vmem:[#allocation4 + $0x58] sm:$0xff]  ;;  %v1016_v15 = vld [vmem:[#allocation4 + $0x60] sm:$0xff]  ;;  %vm3896_vm8 = vcmask 1047559   ;;  %s2181_s27 = smov 32  }
  0x24   :  { %74 = vst.msk [vmem:[#allocation2 + $0x19] sm:$0xff] %vm46_vm0, %v66_v5  ;;  %75 = vst.msk [vmem:[#allocation2 + $0x21] sm:$0xff] %vm46_vm0, %v67_v6  ;;  %v1017_v16 = vld [vmem:[#allocation4 + $0x68] sm:$0xff]  ;;  %v1018_v17 = vld [vmem:[#allocation4 + $0x70] sm:$0xff]  ;;  %s2182_s28 = smov 40   ;;  %s2183_s29 = smov 24  }
  0x25   :  { %76 = vst.msk [vmem:[#allocation2 + $0x31] sm:$0xff] %vm46_vm0, %v68_v7  ;;  %77 = vst.msk [vmem:[#allocation2 + $0x39] sm:$0xff] %vm46_vm0, %v69_v8  ;;  %v1019_v18 = vld [vmem:[#allocation4 + $0x78] sm:$0xff]  ;;  %s2184_s30 = smov 16   ;;  %vm3892_vm9 = vcmask 64512   ;;  %s2185_s5 = smov 48  }
  0x26   :  { %78 = vst.msk [vmem:[#allocation2 + $0x49] sm:$0xff] %vm46_vm0, %v70_v9  ;;  %79 = vst.msk [vmem:[#allocation2 + $0x51] sm:$0xff] %vm46_vm0, %v71_v10  ;;  %vm3891_vm10 = vcmask 60416   ;;  %s2186_s6 = smov 56   ;;  %vm2187_vm11 = vmmov 0   ;;  %vm3890_vm12 = vcmask 130113  }
  0x27   :  { %vm3889_vm13 = vcmask 195714   ;;  %vm3888_vm14 = vcmask 261315   ;;  %vm3886_vm15 = vcmask 326916   ;;  %vm3887_vm1 = vcmask 392517  }
  0x2a   :  { %v80_v19 = vld [vmem:[#allocation2] ss:$2 sm:$0xff]  ;;  %v185_v20 = vld [vmem:[#allocation2 + $0x1] ss:$2 sm:$0xff] }
  0x2b   :  { %v82_v21 = vld [vmem:[#allocation2 + $0x18] ss:$2 sm:$0xff]  ;;  %2007 = vmatprep.mubr.msk.f32.mxu0 %vm46_vm0, %v80_v19  ;;  %2017 = vmatprep.mubr.msk.f32.mxu1 %vm46_vm0, %v185_v20  ;;  %v187_v22 = vld [vmem:[#allocation2 + $0x19] ss:$2 sm:$0xff] }
  0x2c   :  { %v84_v23 = vld [vmem:[#allocation2 + $0x30] ss:$2 sm:$0xff]  ;;  %v189_v24 = vld [vmem:[#allocation2 + $0x31] ss:$2 sm:$0xff]  ;;  %2008 = vmatmul.mubr.msk.f32.vlgmr.msra.gmra.mxu0 %vm46_vm0, %v82_v21  ;;  %2018 = vmatmul.mubr.msk.f32.vlgmr.msra.gmra.mxu1 %vm46_vm0, %v187_v22 }
  0x2d   :  { %v86_v25 = vld [vmem:[#allocation2 + $0x48] ss:$2 sm:$0xff]  ;;  %v191_v26 = vld [vmem:[#allocation2 + $0x49] ss:$2 sm:$0xff]  ;;  %2010 = vmatprep.mubr.msk.f32.mxu0 %vm46_vm0, %v84_v23  ;;  %2020 = vmatprep.mubr.msk.f32.mxu1 %vm46_vm0, %v189_v24 }
  0x2e   :  { %v290_v27 = vld [vmem:[#allocation2 + $0x2] ss:$2 sm:$0xff]  ;;  %v294_v29 = vld [vmem:[#allocation2 + $0x32] ss:$2 sm:$0xff]  ;;  %2024 = vmatpush3.msra.mxu0 %v2247_v1 }
  0x2f   :  { %1020 = vst.msk [vmem:[#allocation2 + $0x1] sm:$0xff] %vm46_vm0, %v1012_v11  ;;  %1021 = vst.msk [vmem:[#allocation2 + $0x9] sm:$0xff] %vm46_vm0, %v1013_v12  ;;  %v292_v28 = vld [vmem:[#allocation2 + $0x1a] ss:$2 sm:$0xff]  ;;  %v296_v30 = vld [vmem:[#allocation2 + $0x4a] ss:$2 sm:$0xff]  ;;  %2025 = vmatprep.subr.mxu0 %v2249_v2 }
  0x30   :  { %1022 = vst.msk [vmem:[#allocation2 + $0x19] sm:$0xff] %vm46_vm0, %v1014_v13  ;;  %1023 = vst.msk [vmem:[#allocation2 + $0x21] sm:$0xff] %vm46_vm0, %v1015_v14  ;;  %2011 = vmatmul.mubr.msk.f32.gmra.mxu0 %vm46_vm0, %v86_v25  ;;  %2021 = vmatmul.mubr.msk.f32.gmra.mxu1 %vm46_vm0, %v191_v26 }
  0x31   :  { %1024 = vst.msk [vmem:[#allocation2 + $0x31] sm:$0xff] %vm46_vm0, %v1016_v15  ;;  %1025 = vst.msk [vmem:[#allocation2 + $0x39] sm:$0xff] %vm46_vm0, %v1017_v16  ;;  %2026 = vmatpush3.msra.mxu0 %v2249_v2  ;;  %2027 = vmatprep.mubr.msk.f32.mxu0 %vm46_vm0, %v290_v27 }
  0x32   :  { %1026 = vst.msk [vmem:[#allocation2 + $0x49] sm:$0xff] %vm46_vm0, %v1018_v17  ;;  %1027 = vst.msk [vmem:[#allocation2 + $0x51] sm:$0xff] %vm46_vm0, %v1019_v18  ;;  %2056 = vmatprep.subr.mxu0 %v2247_v1  ;;  %2043 = vmatprep.mubr.msk.f32.mxu1 %vm2187_vm11, %v2178_v0 }
  0x34   :  { %2028 = vmatmul.mubr.msk.f32.vlgmr.msra.gmra.mxu0 %vm46_vm0, %v292_v28 }
  0x35   :  { %2030 = vmatprep.mubr.msk.f32.mxu0 %vm46_vm0, %v294_v29  ;;  %2057 = vmatpush3.msra.mxu0 %v2247_v1 }
  0x36   :  { %2058 = vmatprep.subr.mxu0 %v2249_v2  ;;  %v1129_v14 = vld [vmem:[#allocation2 + $0x1] ss:$2 sm:$0xff] }
  0x37   :  { %2059 = vmatpush3.msra.mxu0 %v2249_v2  ;;  %v1130_v15 = vld [vmem:[#allocation2 + $0x19] ss:$2 sm:$0xff] }
  0x38   :  { %2031 = vmatmul.mubr.msk.f32.gmra.mxu0 %vm46_vm0, %v296_v30  ;;  %2076 = vmatprep.subr.mxu0 %v2178_v0  ;;  %v1131_v16 = vld [vmem:[#allocation2 + $0x31] ss:$2 sm:$0xff] }
  0x39   :  { %2060 = vmatprep.mubr.msk.f32.mxu0 %vm46_vm0, %v1129_v14  ;;  %v1132_v17 = vld [vmem:[#allocation2 + $0x49] ss:$2 sm:$0xff] }
  0x3c   :  { %2061 = vmatmul.mubr.msk.f32.vlgmr.msra.gmra.mxu0 %vm46_vm0, %v1130_v15 }
  0x3d   :  { %2063 = vmatprep.mubr.msk.f32.mxu0 %vm46_vm0, %v1131_v16 }
  0x40   :  { %2064 = vmatmul.mubr.msk.f32.gmra.mxu0 %vm46_vm0, %v1132_v17 }
  0x41   :  { %2086 = vmatprep.mubr.msk.f32.mxu0 %vm2187_vm11, %v2178_v0  ;;  %vm3893_vm11 = vcmask 130112  }
  0xec   :  { %v2009_v31 = vpop.f32.mrf.mxu0  ;;  %v2019_v32 = vpop.f32.mrf.mxu1 }
  0xed   :  { %420 = vrot.lane.b32.xlu0 %v2019_v32, %s2179_s0  ;;  %408 = vrot.lane.b32.xlu1 %v2009_v31, %s2180_s1  ;;  %v2301_v35 = vrot.slane %v2019_v32, 3  ;;  %v2305_v37 = vrot.slane %v2009_v31, 7 }
  0xee   :  { %v2299_v33 = vpop.f32.mrf.mxu0  ;;  %v270_v34 = vpop.f32.mrf.mxu1 }
  0xef   :  { %v2303_v36 = vrot.slane %v270_v34, 4  ;;  %v643_v47 = vsel %vm464_vm3, %v2305_v37, %v2299_v33  ;;  %v589_v49 = vsel %vm461_vm4, %v2305_v37, %v2299_v33  ;;  %v535_v50 = vsel %vm458_vm5, %v2305_v37, %v2299_v33 }
  0xf0   :  { %v2012_v38 = vpop.f32.mrf.mxu0  ;;  %v2022_v39 = vpop.f32.mrf.mxu1  ;;  %v456_v60 = vsel %vm455_vm2, %v2305_v37, %v2299_v33  ;;  %v697_v9 = vsel %vm467_vm6, %v2305_v37, %v2299_v33  ;;  %v750_v12 = vsel %vm3897_vm7, %v2305_v37, %v2299_v33 }
  0xf1   :  { %400 = vrot.lane.b32.xlu0 %v2009_v31, %s2179_s0  ;;  %428 = vrot.lane.b32.xlu1 %v2019_v32, %s2180_s1  ;;  %v707_v40 = vsel %vm455_vm2, %v2301_v35, %v2303_v36  ;;  %v2316_v45 = vrot.slane %v2022_v39, 1  ;;  %v2410_v8 = vrot.slane %v2012_v38, 5 }
  0xf2   :  { %v175_v41 = vpop.f32.mrf.mxu0  ;;  %v280_v42 = vpop.f32.mrf.mxu1 }
  0xf3   :  { %v2312_v43 = vrot.slane %v175_v41, 6  ;;  %v2314_v44 = vrot.slane %v280_v42, 2 }
  0xf4   :  { %v2029_v46 = vpop.f32.mrf.mxu0 }
  0xf5   :  { %398 = vrot.lane.b32.xlu0 %v2299_v33, %s2179_s0  ;;  %406 = vrot.lane.b32.xlu1 %v2299_v33, %s2180_s1  ;;  %v2327_v48 = vsel %vm467_vm6, %v2312_v43, %v643_v47  ;;  %v2335_v51 = vrot.slane %v2029_v46, 7  ;;  %v2341_v53 = vsel %vm464_vm3, %v2312_v43, %v589_v49  ;;  %v2345_v54 = vsel %vm461_vm4, %v2312_v43, %v535_v50 }
  0xf6   :  { %v2337_v52 = vpop.f32.mrf.mxu0  ;;  %v708_v55 = vsel %vm458_vm5, %v2314_v44, %v707_v40  ;;  %v654_v58 = vsel %vm455_vm2, %v2314_v44, %v2301_v35  ;;  %v2359_v59 = vsel %vm455_vm2, %v2312_v43, %v2305_v37  ;;  %v2372_v62 = vsel %vm458_vm5, %v2312_v43, %v456_v60 }
  0xf7   :  { %v2351_v57 = vsel %vm461_vm4, %v2316_v45, %v708_v55  ;;  %v2368_v61 = vsel %vm458_vm5, %v2316_v45, %v654_v58  ;;  %v504_v2 = vsel %vm455_vm2, %v2335_v51, %v2337_v52  ;;  %v698_v10 = vsel %vm3897_vm7, %v2312_v43, %v697_v9 }
  0xf8   :  { %v2032_v56 = vpop.f32.mrf.mxu0  ;;  %v699_v11 = vsel %vm3896_vm8, %v2410_v8, %v698_v10  ;;  %v751_v13 = vsel %vm3896_vm8, %v2312_v43, %v750_v12  ;;  %v645_v26 = vsel %vm3897_vm7, %v2410_v8, %v2327_v48  ;;  %v591_v27 = vsel %vm467_vm6, %v2410_v8, %v2341_v53 }
  0xf9   :  { %418 = vrot.lane.b32.xlu1 %v270_v34, %s2179_s0  ;;  %404 = vrot.lane.b32.xlu0 %v2012_v38, %s2179_s0  ;;  %v2374_v63 = vrot.slane %v2032_v56, 5  ;;  %v537_v55 = vsel %vm464_vm3, %v2410_v8, %v2345_v54  ;;  %v601_v54 = vsel %vm455_vm2, %v2316_v45, %v2314_v44 }
  0xfa   :  { %v385_v1 = vpop.f32.mrf.mxu0 }
  0xfb   :  { %v2379_v3 = vrot.slane %v385_v1, 6 }
  0xfd   :  { %426 = vrot.lane.b32.xlu1 %v270_v34, %s2180_s1  ;;  %432 = vrot.lane.b32.xlu0 %v2022_v39, %s2180_s1  ;;  %v885_v4 = vsel %vm455_vm2, %v2379_v3, %v2335_v51  ;;  %v506_v5 = vsel %vm458_vm5, %v2379_v3, %v504_v2  ;;  %v808_v34 = vsel %vm455_vm2, %v2410_v8, %v2312_v43 }
  0xfe   :  { %v2390_v6 = vsel %vm458_vm5, %v2374_v63, %v885_v4  ;;  %v2394_v7 = vsel %vm461_vm4, %v2374_v63, %v506_v5 }
 0x101   :  { %412 = vrot.lane.b32.xlu1 %v2012_v38, %s2180_s1  ;;  %424 = vrot.lane.b32.xlu0 %v2022_v39, %s2179_s0  ;;  %v865_v39 = vsel %vm458_vm5, %v2410_v8, %v2359_v59 }
 0x105   :  { %410 = vrot.lane.b32.xlu0 %v175_v41, %s2180_s1  ;;  %402 = vrot.lane.b32.xlu1 %v175_v41, %s2179_s0 }
 0x109   :  { %422 = vrot.lane.b32.xlu0 %v280_v42, %s2179_s0  ;;  %430 = vrot.lane.b32.xlu1 %v280_v42, %s2180_s1 }
 0x10d   :  { %448 = vrot.lane.b32.xlu0 %v2029_v46, %s2180_s1  ;;  %440 = vrot.lane.b32.xlu1 %v2029_v46, %s2179_s0 }
 0x111   :  { %446 = vrot.lane.b32.xlu1 %v2337_v52, %s2180_s1  ;;  %438 = vrot.lane.b32.xlu0 %v2337_v52, %s2179_s0 }
 0x115   :  { %444 = vrot.lane.b32.xlu1 %v2032_v56, %s2179_s0  ;;  %442 = vrot.lane.b32.xlu0 %v385_v1, %s2179_s0 }
 0x119   :  { %452 = vrot.lane.b32.xlu1 %v2032_v56, %s2180_s1  ;;  %450 = vrot.lane.b32.xlu0 %v385_v1, %s2180_s1 }
 0x11d   :  { %728 = vrot.lane.b32.xlu1 %v699_v11, %s2181_s27 }
 0x121   :  { %780 = vrot.lane.b32.xlu1 %v751_v13, %s2182_s28 }
 0x15f   :  { %v421_v18 = vpop.permute.xlu0 %420  ;;  %v409_v19 = vpop.permute.xlu1 %408 }
 0x160   :  { %v2493_v2 = vrot.slane %v421_v18, 7  ;;  %v2495_v4 = vrot.slane %v409_v19, 7 }
 0x163   :  { %v401_v20 = vpop.permute.xlu0 %400  ;;  %v429_v21 = vpop.permute.xlu1 %428 }
 0x164   :  { %v2436_v25 = vrot.slane %v401_v20, 3  ;;  %v2504_v9 = vrot.slane %v429_v21, 3 }
 0x167   :  { %v399_v22 = vpop.permute.xlu0 %398  ;;  %v2432_v23 = vpop.permute.xlu1 %406 }
 0x168   :  { %v2434_v24 = vrot.slane %v399_v22, 4 }
 0x16a   :  { %v646_v28 = vsel %vm3896_vm8, %v2434_v24, %v645_v26  ;;  %v592_v29 = vsel %vm3897_vm7, %v2434_v24, %v591_v27  ;;  %v809_v38 = vsel %vm458_vm5, %v2434_v24, %v808_v34  ;;  %v866_v46 = vsel %vm461_vm4, %v2434_v24, %v865_v39 }
 0x16b   :  { %v2448_v30 = vpop.permute.xlu1 %418  ;;  %v405_v31 = vpop.permute.xlu0 %404  ;;  %674 = vrot.lane.b32.xlu0 %v646_v28, %s2183_s29  ;;  %v593_v32 = vsel %vm3896_vm8, %v2436_v25, %v592_v29  ;;  %v2464_v42 = vsel %vm461_vm4, %v2436_v25, %v809_v38  ;;  %v2472_v43 = vsel %vm464_vm3, %v2436_v25, %v866_v46  ;;  %v538_v59 = vsel %vm467_vm6, %v2434_v24, %v537_v55 }
 0x16c   :  { %620 = vrot.lane.b32.xlu1 %v593_v32, %s2184_s30  ;;  %v2474_v48 = vrot.slane %v405_v31, 1  ;;  %v752_v60 = vsel %vm455_vm2, %v2434_v24, %v2410_v8  ;;  %v539_v15 = vsel %vm3897_vm7, %v2436_v25, %v538_v59  ;;  %v710_v16 = vsel %vm464_vm3, %v2448_v30, %v2351_v57 }
 0x16d   :  { %v753_v18 = vsel %vm458_vm5, %v2436_v25, %v752_v60  ;;  %v602_v26 = vsel %vm458_vm5, %v2448_v30, %v601_v54  ;;  %v656_v57 = vsel %vm461_vm4, %v2448_v30, %v2368_v61  ;;  %v548_v32 = vsel %vm455_vm2, %v2448_v30, %v2316_v45 }
 0x16e   :  { %v541_v11 = vsel %vm455_vm2, %v2432_v23, %v2474_v48  ;;  %v711_v39 = vsel %vm467_vm6, %v2493_v2, %v710_v16  ;;  %v700_v46 = vsel %vm455_vm2, %v2436_v25, %v2434_v24  ;;  %v549_v60 = vsel %vm458_vm5, %v2493_v2, %v548_v32 }
 0x16f   :  { %v427_v40 = vpop.permute.xlu1 %426  ;;  %v433_v41 = vpop.permute.xlu0 %432  ;;  %v542_v27 = vsel %vm458_vm5, %v2495_v4, %v541_v11 }
 0x170   :  { %v2468_v47 = vrot.slane %v433_v41, 1  ;;  %v2523_v19 = vrot.slane %v427_v40, 4 }
 0x172   :  { %v555_v49 = vsel %vm455_vm2, %v2337_v52, %v2468_v47 }
 0x173   :  { %v413_v50 = vpop.permute.xlu1 %412  ;;  %v425_v53 = vpop.permute.xlu0 %424  ;;  %v556_v56 = vsel %vm458_vm5, %v2335_v51, %v555_v49 }
 0x174   :  { %v2484_v58 = vrot.slane %v413_v50, 5  ;;  %v557_v1 = vsel %vm461_vm4, %v2379_v3, %v556_v56  ;;  %v2506_v10 = vrot.slane %v425_v53, 5  ;;  %v603_v50 = vsel %vm461_vm4, %v2493_v2, %v602_v26 }
 0x175   :  { %v2502_v5 = vsel %vm464_vm3, %v2374_v63, %v557_v1  ;;  %v657_v53 = vsel %vm464_vm3, %v2493_v2, %v656_v57 }
 0x176   :  { %v759_v12 = vsel %vm455_vm2, %v2303_v36, %v2484_v58  ;;  %v766_v61 = vsel %vm455_vm2, %v2523_v19, %v2506_v10 }
 0x177   :  { %v411_v13 = vpop.permute.xlu0 %410  ;;  %v403_v14 = vpop.permute.xlu1 %402  ;;  %v760_v17 = vsel %vm458_vm5, %v2301_v35, %v759_v12  ;;  %v767_v1 = vsel %vm458_vm5, %v2504_v9, %v766_v61 }
 0x178   :  { %v2525_v20 = vrot.slane %v411_v13, 6  ;;  %v2527_v21 = vrot.slane %v403_v14, 2  ;;  %v761_v22 = vsel %vm461_vm4, %v2314_v44, %v760_v17 }
 0x179   :  { %v762_v28 = vsel %vm464_vm3, %v2316_v45, %v761_v22 }
 0x17a   :  { %v540_v29 = vsel %vm3896_vm8, %v2527_v21, %v539_v15  ;;  %v543_v31 = vsel %vm461_vm4, %v2525_v20, %v542_v27  ;;  %v754_v41 = vsel %vm461_vm4, %v2527_v21, %v753_v18  ;;  %v763_v18 = vsel %vm467_vm6, %v2448_v30, %v762_v28 }
 0x17b   :  { %v423_v34 = vpop.permute.xlu0 %422  ;;  %v431_v38 = vpop.permute.xlu1 %430  ;;  %566 = vrot.lane.b32.xlu0 %v540_v29, %s2176_s19  ;;  %v544_v40 = vsel %vm464_vm3, %v2484_v58, %v543_v31  ;;  %v755_v13 = vsel %vm464_vm3, %v2474_v48, %v754_v41  ;;  %v701_v57 = vsel %vm458_vm5, %v2527_v21, %v700_v46  ;;  %v594_v27 = vsel %vm455_vm2, %v2474_v48, %v2527_v21 }
 0x17c   :  { %v2560_v49 = vrot.slane %v423_v34, 6  ;;  %v545_v55 = vsel %vm467_vm6, %v2303_v36, %v544_v40  ;;  %v2568_v56 = vrot.slane %v431_v38, 2  ;;  %v756_v61 = vsel %vm467_vm6, %v2432_v23, %v755_v13 }
 0x17d   :  { %v546_v59 = vsel %vm3897_vm7, %v2301_v35, %v545_v55  ;;  %v595_v46 = vsel %vm458_vm5, %v2432_v23, %v594_v27  ;;  %v702_v55 = vsel %vm461_vm4, %v2474_v48, %v701_v57  ;;  %v647_v27 = vsel %vm455_vm2, %v2527_v21, %v2436_v25 }
 0x17e   :  { %v712_v54 = vsel %vm3897_vm7, %v2560_v49, %v711_v39  ;;  %v604_v11 = vsel %vm464_vm3, %v2560_v49, %v603_v50  ;;  %v658_v12 = vsel %vm467_vm6, %v2560_v49, %v657_v53  ;;  %v550_v17 = vsel %vm461_vm4, %v2560_v49, %v549_v60 }
 0x17f   :  { %v2584_v14 = vpop.permute.xlu1 %440  ;;  %v713_v15 = vsel %vm3896_vm8, %v2506_v10, %v712_v54  ;;  %v605_v16 = vsel %vm467_vm6, %v2506_v10, %v604_v11  ;;  %v659_v26 = vsel %vm3897_vm7, %v2506_v10, %v658_v12  ;;  %v2604_v29 = vpop.permute.xlu0 %448  ;;  %v551_v31 = vsel %vm464_vm3, %v2506_v10, %v550_v17 }
 0x180   :  { %732 = vrot.lane.b32.xlu0 %v713_v15, %s2181_s27  ;;  %v606_v22 = vsel %vm3897_vm7, %v2523_v19, %v605_v16  ;;  %v768_v32 = vsel %vm461_vm4, %v2568_v56, %v767_v1  ;;  %v552_v34 = vsel %vm467_vm6, %v2523_v19, %v551_v31  ;;  %v660_v40 = vsel %vm3896_vm8, %v2523_v19, %v659_v26 }
 0x181   :  { %v607_v28 = vsel %vm3896_vm8, %v2504_v9, %v606_v22  ;;  %v769_v38 = vsel %vm464_vm3, %v2468_v47, %v768_v32  ;;  %v553_v41 = vsel %vm3897_vm7, %v2504_v9, %v552_v34  ;;  %v764_v50 = vsel %vm3897_vm7, %v2493_v2, %v763_v18 }
 0x182   :  { %624 = vrot.lane.b32.xlu1 %v607_v28, %s2184_s30  ;;  %v757_v53 = vsel %vm3897_vm7, %v2495_v4, %v756_v61  ;;  %v714_v60 = vsel %vm455_vm2, %v2504_v9, %v2523_v19  ;;  %v547_v1 = vsel %vm3896_vm8, %v2314_v44, %v546_v59  ;;  %v770_v54 = vsel %vm467_vm6, %v2337_v52, %v769_v38 }
 0x183   :  { %v2619_v39 = vpop.permute.xlu1 %446  ;;  %v596_v11 = vsel %vm461_vm4, %v2495_v4, %v595_v46  ;;  %v715_v12 = vsel %vm458_vm5, %v2568_v56, %v714_v60  ;;  %v554_v13 = vsel %vm3896_vm8, %v2568_v56, %v553_v41  ;;  %v608_v16 = vsel %vm455_vm2, %v2468_v47, %v2568_v56  ;;  %v439_v17 = vpop.permute.xlu0 %438 }
 0x184   :  { %678 = vrot.lane.b32.xlu0 %v660_v40, %s2183_s29  ;;  %v597_v15 = vsel %vm464_vm3, %v2525_v20, %v596_v11  ;;  %v716_v59 = vsel %vm461_vm4, %v2468_v47, %v715_v12  ;;  %v609_v57 = vsel %vm458_vm5, %v2337_v52, %v608_v16  ;;  %v771_v28 = vsel %vm3897_vm7, %v2335_v51, %v770_v54 }
 0x185   :  { %v598_v22 = vsel %vm467_vm6, %v2484_v58, %v597_v15  ;;  %v717_v26 = vsel %vm464_vm3, %v2337_v52, %v716_v59  ;;  %v703_v31 = vsel %vm464_vm3, %v2432_v23, %v702_v55  ;;  %v765_v34 = vsel %vm3896_vm8, %v2560_v49, %v764_v50 }
 0x186   :  { %568 = vrot.lane.b32.xlu1 %v547_v1, %s2176_s19  ;;  %v599_v32 = vsel %vm3897_vm7, %v2303_v36, %v598_v22  ;;  %v718_v61 = vsel %vm467_vm6, %v2335_v51, %v717_v26  ;;  %v610_v41 = vsel %vm461_vm4, %v2335_v51, %v609_v57  ;;  %v648_v50 = vsel %vm458_vm5, %v2474_v48, %v647_v27 }
 0x187   :  { %v445_v18 = vpop.permute.xlu1 %444  ;;  %v600_v38 = vsel %vm3896_vm8, %v2301_v35, %v599_v32  ;;  %v719_v40 = vsel %vm3897_vm7, %v2379_v3, %v718_v61  ;;  %v611_v55 = vsel %vm464_vm3, %v2379_v3, %v610_v41  ;;  %v822_v60 = vsel %vm455_vm2, %v2506_v10, %v2560_v49  ;;  %v443_v59 = vpop.permute.xlu0 %442 }
 0x188   :  { %570 = vrot.lane.b32.xlu0 %v554_v13, %s2176_s19  ;;  %v720_v46 = vsel %vm3896_vm8, %v2374_v63, %v719_v40  ;;  %v772_v54 = vsel %vm3896_vm8, %v2379_v3, %v771_v28  ;;  %v704_v11 = vsel %vm467_vm6, %v2495_v4, %v703_v31  ;;  %v612_v12 = vsel %vm467_vm6, %v2374_v63, %v611_v55 }
 0x189   :  { %v661_v13 = vsel %vm455_vm2, %v2568_v56, %v2504_v9  ;;  %v823_v15 = vsel %vm458_vm5, %v2523_v19, %v822_v60  ;;  %v758_v16 = vsel %vm3896_vm8, %v2525_v20, %v757_v53  ;;  %v649_v22 = vsel %vm461_vm4, %v2432_v23, %v648_v50 }
 0x18a   :  { %784 = vrot.lane.b32.xlu1 %v765_v34, %s2182_s28  ;;  %v662_v26 = vsel %vm458_vm5, %v2468_v47, %v661_v13  ;;  %v705_v27 = vsel %vm3897_vm7, %v2525_v20, %v704_v11  ;;  %v815_v53 = vsel %vm455_vm2, %v2484_v58, %v2525_v20  ;;  %v824_v31 = vsel %vm461_vm4, %v2504_v9, %v823_v15 }
 0x18b   :  { %v453_v1 = vpop.permute.xlu1 %452  ;;  %v663_v28 = vsel %vm461_vm4, %v2337_v52, %v662_v26  ;;  %v816_v61 = vsel %vm458_vm5, %v2303_v36, %v815_v53  ;;  %v2725_v34 = vrot.slane %v439_v17, 4  ;;  %v650_v40 = vsel %vm464_vm3, %v2495_v4, %v649_v22  ;;  %v451_v13 = vpop.permute.xlu0 %450 }
 0x18c   :  { %786 = vrot.lane.b32.xlu0 %v772_v54, %s2182_s28  ;;  %v2709_v57 = vrot.slane %v453_v1, 5  ;;  %v664_v32 = vsel %vm464_vm3, %v2335_v51, %v663_v28  ;;  %v817_v55 = vsel %vm461_vm4, %v2301_v35, %v816_v61  ;;  %v706_v50 = vsel %vm3896_vm8, %v2484_v58, %v705_v27 }
 0x18d   :  { %v665_v41 = vsel %vm467_vm6, %v2379_v3, %v664_v32  ;;  %v818_v17 = vsel %vm464_vm3, %v2314_v44, %v817_v55  ;;  %v825_v1 = vsel %vm464_vm3, %v2568_v56, %v824_v31  ;;  %v2746_v11 = vrot.slane %v445_v18, 1 }
 0x18e   :  { %782 = vrot.lane.b32.xlu1 %v758_v16, %s2182_s28  ;;  %v666_v60 = vsel %vm3897_vm7, %v2374_v63, %v665_v41  ;;  %v819_v54 = vsel %vm467_vm6, %v2316_v45, %v818_v17  ;;  %v651_v15 = vsel %vm467_vm6, %v2525_v20, %v650_v40  ;;  %v613_v16 = vsel %vm3897_vm7, %v2725_v34, %v612_v12 }
 0x18f   :  { %v829_v22 = vsel %vm455_vm2, %v2374_v63, %v2379_v3  ;;  %v462_v26 = vsel %vm461_vm4, %v2410_v8, %v2372_v62  ;;  %v2760_v18 = vrot.slane %v2584_v14, 3  ;;  %v2762_v27 = vrot.slane %v443_v59, 2 }
 0x190   :  { %790 = vrot.lane.b32.xlu0 %v2709_v57, %s2182_s28  ;;  %v826_v28 = vsel %vm467_vm6, %v2468_v47, %v825_v1  ;;  %v2768_v12 = vrot.slane %v451_v13, 6  ;;  %v652_v3 = vsel %vm3897_vm7, %v2484_v58, %v651_v15  ;;  %v559_v62 = vsel %vm467_vm6, %v2725_v34, %v2502_v5 }
 0x191   :  { %v465_v8 = vsel %vm464_vm3, %v2434_v24, %v462_v26  ;;  %v476_v14 = vsel %vm455_vm2, %v2495_v4, %v2432_v23  ;;  %v614_v59 = vsel %vm3896_vm8, %v2760_v18, %v613_v16  ;;  %v490_v53 = vsel %vm455_vm2, %v2493_v2, %v2448_v30 }
 0x192   :  { %730 = vrot.lane.b32.xlu1 %v706_v50, %s2181_s27  ;;  %v2790_v5 = vrot.slane %v2604_v29, 7  ;;  %v827_v24 = vsel %vm3897_vm7, %v2337_v52, %v826_v28  ;;  %v653_v32 = vsel %vm3896_vm8, %v2303_v36, %v652_v3  ;;  %v560_v61 = vsel %vm3897_vm7, %v2760_v18, %v559_v62 }
 0x193   :  { %v468_v29 = vsel %vm467_vm6, %v2436_v25, %v465_v8  ;;  %v820_v41 = vsel %vm3897_vm7, %v2448_v30, %v819_v54  ;;  %v887_v17 = vsel %vm461_vm4, %v2725_v34, %v2390_v6  ;;  %v828_v1 = vsel %vm3896_vm8, %v2335_v51, %v827_v24 }
 0x194   :  { %622 = vrot.lane.b32.xlu0 %v600_v38, %s2184_s30  ;;  %v830_v38 = vsel %vm458_vm5, %v2725_v34, %v829_v22  ;;  %v892_v55 = vsel %vm455_vm2, %v2768_v12, %v2790_v5  ;;  %v561_v25 = vsel %vm3896_vm8, %v2762_v27, %v560_v61  ;;  %v615_v13 = vsel %vm455_vm2, %v2746_v11, %v2762_v27 }
 0x195   :  { %v831_v31 = vsel %vm461_vm4, %v2760_v18, %v830_v38  ;;  %v667_v15 = vsel %vm3896_vm8, %v2725_v34, %v666_v60  ;;  %v836_v51 = vsel %vm455_vm2, %v2709_v57, %v2768_v12  ;;  %v668_v16 = vsel %vm455_vm2, %v2762_v27, %v2760_v18 }
 0x196   :  { %734 = vrot.lane.b32.xlu1 %v720_v46, %s2181_s27  ;;  %v562_v46 = vsel %vm455_vm2, %v2619_v39, %v2746_v11  ;;  %v832_v40 = vsel %vm464_vm3, %v2762_v27, %v831_v31  ;;  %v821_v22 = vsel %vm3896_vm8, %v2493_v2, %v820_v41  ;;  %v893_v26 = vsel %vm458_vm5, %v2709_v57, %v892_v55 }
 0x197   :  { %v563_v50 = vsel %vm458_vm5, %v2790_v5, %v562_v46  ;;  %v833_v6 = vsel %vm467_vm6, %v2746_v11, %v832_v40  ;;  %v888_v60 = vsel %vm464_vm3, %v2760_v18, %v887_v17  ;;  %v773_v28 = vsel %vm455_vm2, %v2725_v34, %v2374_v63 }
 0x198   :  { %626 = vrot.lane.b32.xlu0 %v614_v59, %s2184_s30  ;;  %v564_v54 = vsel %vm461_vm4, %v2768_v12, %v563_v50  ;;  %v889_v3 = vsel %vm467_vm6, %v2762_v27, %v888_v60  ;;  %v616_v62 = vsel %vm458_vm5, %v2619_v39, %v615_v13  ;;  %v871_v8 = vsel %vm455_vm2, %v2525_v20, %v2495_v4 }
 0x199   :  { %v565_v38 = vsel %vm464_vm3, %v2709_v57, %v564_v54  ;;  %v834_v59 = vsel %vm3897_vm7, %v2619_v39, %v833_v6  ;;  %v669_v63 = vsel %vm458_vm5, %v2746_v11, %v668_v16  ;;  %v721_v46 = vsel %vm455_vm2, %v2760_v18, %v2725_v34 }
 0x19a   :  { %676 = vrot.lane.b32.xlu1 %v653_v32, %s2183_s29  ;;  %v872_v24 = vsel %vm458_vm5, %v2484_v58, %v871_v8  ;;  %v774_v31 = vsel %vm458_vm5, %v2760_v18, %v773_v28  ;;  %v868_v61 = vsel %vm467_vm6, %v2527_v21, %v2472_v43  ;;  %v471_v40 = vsel %vm3897_vm7, %v2527_v21, %v468_v29 }
 0x19b   :  { %v873_v32 = vsel %vm461_vm4, %v2303_v36, %v872_v24  ;;  %v722_v41 = vsel %vm458_vm5, %v2762_v27, %v721_v46  ;;  %v2880_v50 = vsel %vm3897_vm7, %v2474_v48, %v868_v61  ;;  %v474_v17 = vsel %vm3896_vm8, %v2474_v48, %v471_v40 }
 0x19c   :  { %843 = vrot.lane.b32.xlu0 %v828_v1, %s2185_s5  ;;  %v874_v55 = vsel %vm464_vm3, %v2301_v35, %v873_v32  ;;  %v890_v43 = vsel %vm3897_vm7, %v2746_v11, %v889_v3  ;;  %v775_v29 = vsel %vm461_vm4, %v2762_v27, %v774_v31  ;;  %529 = vst.msk [vmem:[#allocation3] sm:$0xff] %vm3892_vm9, %v474_v17 }
 0x19d   :  { %v875_v1 = vsel %vm467_vm6, %v2314_v44, %v874_v55  ;;  %v478_v54 = vsel %vm458_vm5, %v2525_v20, %v476_v14  ;;  %v617_v13 = vsel %vm461_vm4, %v2790_v5, %v616_v62  ;;  %v492_v6 = vsel %vm458_vm5, %v2560_v49, %v490_v53 }
 0x19e   :  { %680 = vrot.lane.b32.xlu1 %v667_v15, %s2183_s29  ;;  %v480_v15 = vsel %vm461_vm4, %v2484_v58, %v478_v54  ;;  %v670_v16 = vsel %vm461_vm4, %v2619_v39, %v669_v63  ;;  %v723_v20 = vsel %vm461_vm4, %v2746_v11, %v722_v41  ;;  %v776_v58 = vsel %vm464_vm3, %v2746_v11, %v775_v29 }
 0x19f   :  { %v482_v14 = vsel %vm464_vm3, %v2303_v36, %v480_v15  ;;  %v878_v53 = vsel %vm455_vm2, %v2560_v49, %v2493_v2  ;;  %v510_v3 = vsel %vm464_vm3, %v2725_v34, %v2394_v7  ;;  %v724_v8 = vsel %vm464_vm3, %v2619_v39, %v723_v20 }
 0x1a0   :  { %841 = vrot.lane.b32.xlu0 %v821_v22, %s2185_s5  ;;  %v494_v22 = vsel %vm461_vm4, %v2506_v10, %v492_v6  ;;  %v879_v7 = vsel %vm458_vm5, %v2506_v10, %v878_v53  ;;  %v777_v63 = vsel %vm467_vm6, %v2619_v39, %v776_v58  ;;  %v811_v24 = vsel %vm464_vm3, %v2527_v21, %v2464_v42 }
 0x1a1   :  { %v496_v60 = vsel %vm464_vm3, %v2523_v19, %v494_v22  ;;  %v725_v32 = vsel %vm467_vm6, %v2790_v5, %v724_v8  ;;  %v812_v42 = vsel %vm467_vm6, %v2474_v48, %v811_v24 }
 0x1a2   :  { %572 = vrot.lane.b32.xlu1 %v561_v25, %s2176_s19  ;;  %v2898_v25 = vsel %vm3897_vm7, %v2316_v45, %v875_v1  ;;  %v498_v28 = vsel %vm467_vm6, %v2504_v9, %v496_v60  ;;  %v726_v21 = vsel %vm3897_vm7, %v2768_v12, %v725_v32 }
 0x1a3   :  { %v500_v49 = vsel %vm3897_vm7, %v2568_v56, %v498_v28  ;;  %v727_v41 = vsel %vm3896_vm8, %v2709_v57, %v726_v21  ;;  %v1030_v21 = vld [vmem:[#allocation2 + $0x30] ss:$2 sm:$0xff] }
 0x1a4   :  { %847 = vrot.lane.b32.xlu0 %v836_v51, %s2185_s5  ;;  %v484_v51 = vsel %vm467_vm6, %v2301_v35, %v482_v14  ;;  %v518_v35 = vsel %vm455_vm2, %v2790_v5, %v2619_v39  ;;  %v502_v34 = vsel %vm3896_vm8, %v2468_v47, %v500_v49 }
 0x1a5   :  { %v486_v36 = vsel %vm3897_vm7, %v2314_v44, %v484_v51  ;;  %v512_v44 = vsel %vm467_vm6, %v2760_v18, %v510_v3  ;;  %v835_v18 = vsel %vm3896_vm8, %v2790_v5, %v834_v59  ;;  %531 = vst.msk [vmem:[#allocation3 + $0x10] sm:$0xff] %vm3892_vm9, %v502_v34  ;;  %v891_v59 = vsel %vm3896_vm8, %v2619_v39, %v890_v43 }
 0x1a6   :  { %904 = vrot.lane.b32.xlu1 %v893_v26, %s2186_s6  ;;  %v488_v2 = vsel %vm3896_vm8, %v2316_v45, %v486_v36  ;;  %v520_v26 = vsel %vm458_vm5, %v2768_v12, %v518_v35  ;;  %v514_v45 = vsel %vm3897_vm7, %v2762_v27, %v512_v44  ;;  %v618_v27 = vsel %vm464_vm3, %v2768_v12, %v617_v13 }
 0x1a7   :  { %530 = vst.msk [vmem:[#allocation3 + $0x8] sm:$0xff] %vm3892_vm9, %v488_v2  ;;  %v522_v62 = vsel %vm461_vm4, %v2709_v57, %v520_v26  ;;  %v516_v10 = vsel %vm3896_vm8, %v2746_v11, %v514_v45  ;;  %v880_v11 = vsel %vm461_vm4, %v2523_v19, %v879_v7  ;;  %v619_v31 = vsel %vm467_vm6, %v2709_v57, %v618_v27 }
 0x1a8   :  { %574 = vrot.lane.b32.xlu0 %v565_v38, %s2176_s19  ;;  %v671_v38 = vsel %vm464_vm3, %v2790_v5, %v670_v16  ;;  %534 = vst.msk [vmem:[#allocation3 + $0x20] sm:$0xf] %vm3891_vm10, %v522_v62  ;;  %v778_v19 = vsel %vm3897_vm7, %v2790_v5, %v777_v63  ;;  %v881_v39 = vsel %vm464_vm3, %v2504_v9, %v880_v11  ;;  %vm587_vm10 = vcmask 127040  }
 0x1a9   :  { %532 = vst.msk [vmem:[#allocation3 + $0x18] sm:$0xff] %vm3892_vm9, %v516_v10  ;;  %v672_v46 = vsel %vm467_vm6, %v2768_v12, %v671_v38  ;;  %v779_v40 = vsel %vm3896_vm8, %v2768_v12, %v778_v19  ;;  %v882_v5 = vsel %vm467_vm6, %v2568_v56, %v881_v39  ;;  %v813_v9 = vsel %vm3897_vm7, %v2432_v23, %v812_v42  ;;  %v1028_v19 = vld [vmem:[#allocation2] ss:$2 sm:$0xff]  ;;  %v2106_v39 = vld [vmem:[#allocation7 + $0x8] sm:$0xff] }
 0x1aa   :  { %845 = vrot.lane.b32.xlu1 %v835_v18, %s2185_s5  ;;  %v673_v61 = vsel %vm3897_vm7, %v2709_v57, %v672_v46  ;;  %v883_v48 = vsel %vm3897_vm7, %v2468_v47, %v882_v5  ;;  %v814_v55 = vsel %vm3896_vm8, %v2495_v4, %v813_v9  ;;  %v807_v12 = vsel %vm3896_vm8, %v2305_v37, %v2299_v33  ;;  %v729_v37 = vpop.permute.xlu1 %728  ;;  %v2107_v42 = vld [vmem:[#allocation7] sm:$0xff] }
 0x1ab   :  { %v884_v56 = vsel %vm3896_vm8, %v2337_v52, %v883_v48  ;;  %v877_v47 = vsel %vm3896_vm8, %v2448_v30, %v2898_v25  ;;  %v870_v52 = vsel %vm3896_vm8, %v2432_v23, %v2880_v50  ;;  %v3027_v30 = vpop.f32.mrf.mxu0  ;;  %vm3900_vm9 = vcmask 193664   ;;  %v1230_v5 = vld [vmem:[#allocation2 + $0x2] ss:$2 sm:$0xff] }
 0x1ac   :  { %902 = vrot.lane.b32.xlu0 %v891_v59, %s2186_s6  ;;  %vm3905_vm8 = vcmask 518592   ;;  %vm914_vm7 = vcmask 523712   ;;  %v1231_v9 = vld [vmem:[#allocation2 + $0x1a] ss:$2 sm:$0xff]  ;;  %v1233_v48 = vld [vmem:[#allocation2 + $0x4a] ss:$2 sm:$0xff] }
 0x1ae   :  { %628 = vrot.lane.b32.xlu1 %v619_v31, %s2184_s30  ;;  %v781_v57 = vpop.permute.xlu1 %780  ;;  %v3096_v31 = vld [vmem:[%s3883_s2] sm:$0xff] }
 0x1b0   :  { %682 = vrot.lane.b32.xlu0 %v673_v61, %s2183_s29  ;;  %v1029_v61 = vld [vmem:[#allocation2 + $0x18] ss:$2 sm:$0xff] }
 0x1b2   :  { %788 = vrot.lane.b32.xlu1 %v779_v40, %s2182_s28  ;;  %v1031_v40 = vld [vmem:[#allocation2 + $0x48] ss:$2 sm:$0xff] }
 0x1b4   :  { %736 = vrot.lane.b32.xlu0 %v727_v41, %s2181_s27  ;;  %v1232_v41 = vld [vmem:[#allocation2 + $0x32] ss:$2 sm:$0xff] }
 0x1b6   :  { %839 = vrot.lane.b32.xlu1 %v814_v55, %s2185_s5 }
 0x1b8   :  { %900 = vrot.lane.b32.xlu0 %v884_v56, %s2186_s6 }
 0x1ba   :  { %837 = vrot.lane.b32.xlu1 %v807_v12, %s2185_s5 }
 0x1bc   :  { %898 = vrot.lane.b32.xlu0 %v877_v47, %s2186_s6 }
 0x1be   :  { %894 = vrot.lane.b32.xlu1 %v2299_v33, %s2186_s6  ;;  %v3031_v33 = vpop.f32.mrf.mxu0 }
 0x1c0   :  { %896 = vrot.lane.b32.xlu0 %v870_v52, %s2186_s6  ;;  %v3034_v23 = vpop.f32.mrf.mxu0 }
 0x1c2   :  { %1369 = vrot.lane.b32.xlu1 %v3034_v23, %s2180_s1  ;;  %v3040_v50 = vpop.f32.mrf.mxu0 }
 0x1c4   :  { %1357 = vrot.lane.b32.xlu0 %v3027_v30, %s2179_s0 }
 0x1c6   :  { %1367 = vrot.lane.b32.xlu1 %v3040_v50, %s2180_s1 }
 0x1c8   :  { %1359 = vrot.lane.b32.xlu0 %v3040_v50, %s2179_s0 }
 0x1ca   :  { %1355 = vrot.lane.b32.xlu1 %v3031_v33, %s2179_s0 }
 0x1cc   :  { %1361 = vrot.lane.b32.xlu0 %v3034_v23, %s2179_s0 }
 0x1ce   :  { %1365 = vrot.lane.b32.xlu1 %v3027_v30, %s2180_s1 }
 0x1d2   :  { %1363 = vrot.lane.b32.xlu1 %v3031_v33, %s2180_s1 }
 0x1dd   :  { %v675_v4 = vpop.permute.xlu0 %674 }
 0x1de   :  { %v621_v43 = vpop.permute.xlu1 %620 }
 0x1ed   :  { %v567_v17 = vpop.permute.xlu0 %566 }
 0x1ee   :  { %582 = vst.msk [vmem:[#allocation3 - $0x1] sm:$0xfe] %vm3890_vm12, %v567_v17  ;;  %vm857_vm12 = vcmask 458112  }
 0x1ef   :  { %636 = vst.msk [vmem:[#allocation3 - $0x2] sm:$0xfc] %vm3889_vm13, %v621_v43  ;;  %vm800_vm13 = vcmask 392512  }
 0x1f0   :  { %690 = vst.msk [vmem:[#allocation3 - $0x3] sm:$0xf8] %vm3888_vm14, %v675_v4  ;;  %vm745_vm14 = vcmask 326912  }
 0x1f1   :  { %744 = vst.msk [vmem:[#allocation3 - $0x4] sm:$0xf0] %vm3886_vm15, %v729_v37  ;;  %vm3895_vm15 = vcmask 195712  }
 0x1f2   :  { %v733_v29 = vpop.permute.xlu0 %732  ;;  %799 = vst.msk [vmem:[#allocation3 - $0x5] sm:$0xe0] %vm3887_vm1, %v781_v57  ;;  %vm3894_vm1 = vcmask 261312  }
 0x1f4   :  { %v625_v1 = vpop.permute.xlu1 %624 }
 0x1f6   :  { %v679_v54 = vpop.permute.xlu0 %678 }
 0x1f8   :  { %v569_v13 = vpop.permute.xlu1 %568 }
 0x1f9   :  { %584 = vst.msk [vmem:[#allocation3 + $0x7] sm:$0xff] %vm3893_vm11, %v569_v13 }
 0x1fa   :  { %v571_v25 = vpop.permute.xlu0 %570 }
 0x1fb   :  { %585 = vst.msk [vmem:[#allocation3 + $0xf] sm:$0xff] %vm3893_vm11, %v571_v25 }
 0x1fc   :  { %639 = vst.msk [vmem:[#allocation3 + $0xe] sm:$0xff] %vm3895_vm15, %v625_v1  ;;  %v785_v15 = vpop.permute.xlu1 %784 }
 0x1fe   :  { %v787_v6 = vpop.permute.xlu0 %786 }
 0x200   :  { %v783_v16 = vpop.permute.xlu1 %782 }
 0x202   :  { %v791_v20 = vpop.permute.xlu0 %790 }
 0x204   :  { %v731_v14 = vpop.permute.xlu1 %730 }
 0x206   :  { %v623_v22 = vpop.permute.xlu0 %622 }
 0x207   :  { %638 = vst.msk [vmem:[#allocation3 + $0x6] sm:$0xff] %vm3895_vm15, %v623_v22 }
 0x208   :  { %693 = vst.msk [vmem:[#allocation3 + $0xd] sm:$0xff] %vm3894_vm1, %v679_v54  ;;  %v735_v58 = vpop.permute.xlu1 %734 }
 0x20a   :  { %v627_v53 = vpop.permute.xlu0 %626 }
 0x20c   :  { %v677_v51 = vpop.permute.xlu1 %676 }
 0x20d   :  { %692 = vst.msk [vmem:[#allocation3 + $0x5] sm:$0xff] %vm3894_vm1, %v677_v51  ;;  %v3145_v51 = vrot.slane %v3034_v23, 1 }
 0x20e   :  { %746 = vst.msk [vmem:[#allocation3 + $0x4] sm:$0xff] %vm745_vm14, %v731_v14  ;;  %747 = vst.msk [vmem:[#allocation3 + $0xc] sm:$0xff] %vm745_vm14, %v733_v29  ;;  %v844_v60 = vpop.permute.xlu0 %843 }
 0x20f   :  { %801 = vst.msk [vmem:[#allocation3 + $0x3] sm:$0xff] %vm800_vm13, %v783_v16  ;;  %802 = vst.msk [vmem:[#allocation3 + $0xb] sm:$0xff] %vm800_vm13, %v785_v15 }
 0x210   :  { %v681_v36 = vpop.permute.xlu1 %680 }
 0x212   :  { %v842_v28 = vpop.permute.xlu0 %841 }
 0x213   :  { %859 = vst.msk [vmem:[#allocation3 + $0xa] sm:$0xff] %vm857_vm12, %v842_v28 }
 0x214   :  { %v573_v3 = vpop.permute.xlu1 %572 }
 0x215   :  { %586 = vst.msk [vmem:[#allocation3 + $0x17] sm:$0xff] %vm3893_vm11, %v573_v3  ;;  %vm3898_vm11 = vcmask 260288  }
 0x216   :  { %640 = vst.msk [vmem:[#allocation3 + $0x16] sm:$0xff] %vm3895_vm15, %v627_v53  ;;  %v848_v35 = vpop.permute.xlu0 %847  ;;  %vm862_vm15 = vcmask 451968  }
 0x217   :  { %694 = vst.msk [vmem:[#allocation3 + $0x15] sm:$0xff] %vm3894_vm1, %v681_v36  ;;  %vm3899_vm1 = vcmask 385344  }
 0x218   :  { %v905_v2 = vpop.permute.xlu1 %904  ;;  %748 = vst.msk [vmem:[#allocation3 + $0x14] sm:$0xff] %vm745_vm14, %v735_v58 }
 0x219   :  { %803 = vst.msk [vmem:[#allocation3 + $0x13] sm:$0xff] %vm800_vm13, %v787_v6 }
 0x21a   :  { %v575_v49 = vpop.permute.xlu0 %574  ;;  %860 = vst.msk [vmem:[#allocation3 + $0x12] sm:$0xff] %vm857_vm12, %v844_v60  ;;  %v3148_v60 = vrot.slane %v3040_v50, 2 }
 0x21b   :  { %588 = vst.msk [vmem:[#allocation3 + $0x1f] sm:$0x1f] %vm587_vm10, %v575_v49 }
 0x21c   :  { %v846_v44 = vpop.permute.xlu1 %845  ;;  %v1526_v23 = vsel %vm455_vm2, %v3145_v51, %v3148_v60 }
 0x21e   :  { %v903_v26 = vpop.permute.xlu0 %902 }
 0x220   :  { %v629_v7 = vpop.permute.xlu1 %628 }
 0x221   :  { %642 = vst.msk [vmem:[#allocation3 + $0x1e] sm:$0x3f] %vm3900_vm9, %v629_v7  ;;  %vm3903_vm9 = vcmask 1043456  }
 0x222   :  { %v683_v34 = vpop.permute.xlu0 %682 }
 0x223   :  { %696 = vst.msk [vmem:[#allocation3 + $0x1d] sm:$0x7f] %vm3898_vm11, %v683_v34  ;;  %vm3904_vm11 = vcmask 458118  }
 0x224   :  { %v789_v45 = vpop.permute.xlu1 %788 }
 0x226   :  { %v737_v62 = vpop.permute.xlu0 %736 }
 0x227   :  { %749 = vst.msk [vmem:[#allocation3 + $0x1c] sm:$0xff] %vm745_vm14, %v737_v62 }
 0x228   :  { %804 = vst.msk [vmem:[#allocation3 + $0x1b] sm:$0xff] %vm800_vm13, %v789_v45  ;;  %v840_v18 = vpop.permute.xlu1 %839 }
 0x229   :  { %806 = vst.msk [vmem:[#allocation3 + $0x23] sm:$0x1] %vm3899_vm1, %v791_v20  ;;  %vm3901_vm1 = vcmask 523719  }
 0x22a   :  { %861 = vst.msk [vmem:[#allocation3 + $0x1a] sm:$0xff] %vm857_vm12, %v846_v44  ;;  %858 = vst.msk [vmem:[#allocation3 + $0x2] sm:$0xff] %vm857_vm12, %v840_v18  ;;  %v901_v38 = vpop.permute.xlu0 %900 }
 0x22b   :  { %863 = vst.msk [vmem:[#allocation3 + $0x22] sm:$0x3] %vm862_vm15, %v848_v35 }
 0x22c   :  { %920 = vst.msk [vmem:[#allocation3 + $0x21] sm:$0x7] %vm3905_vm8, %v905_v2  ;;  %v838_v10 = vpop.permute.xlu1 %837 }
 0x22d   :  { %918 = vst.msk [vmem:[#allocation3 + $0x19] sm:$0xff] %vm914_vm7, %v903_v26  ;;  %917 = vst.msk [vmem:[#allocation3 + $0x11] sm:$0xff] %vm914_vm7, %v901_v38 }
 0x22e   :  { %856 = vst.msk [vmem:[#allocation3 - $0x6] sm:$0xc0] %vm3904_vm11, %v838_v10  ;;  %v899_v27 = vpop.permute.xlu0 %898 }
 0x22f   :  { %916 = vst.msk [vmem:[#allocation3 + $0x9] sm:$0xff] %vm914_vm7, %v899_v27 }
 0x230   :  { %v895_v8 = vpop.permute.xlu1 %894 }
 0x231   :  { %913 = vst.msk [vmem:[#allocation3 - $0x7] sm:$0x80] %vm3901_vm1, %v895_v8  ;;  %vm3902_vm1 = vcmask 293888  }
 0x232   :  { %v897_v63 = vpop.permute.xlu0 %896 }
 0x233   :  { %915 = vst.msk [vmem:[#allocation3 + $0x1] sm:$0xff] %vm914_vm7, %v897_v63 }
 0x234   :  { %v925_v59 = vld [vmem:[#allocation3 + $0x20] sm:$0xf]  ;;  %v924_v11 = vld [vmem:[#allocation3 + $0x18] sm:$0xff]  ;;  %v1370_v55 = vpop.permute.xlu1 %1369 }
 0x235   :  { %2034 = vmatpush3.msk.msra.mxu1 %vm3903_vm9, %v925_v59  ;;  %v3150_v36 = vrot.slane %v1370_v55, 1  ;;  %v3242_v55 = vrot.slane %v3027_v30, 3 }
 0x236   :  { %2035 = vmatprep.subr.mxu1 %v2178_v0  ;;  %v923_v46 = vld [vmem:[#allocation3 + $0x10] sm:$0xff]  ;;  %v1358_v12 = vpop.permute.xlu0 %1357 }
 0x237   :  { %2036 = vmatpush3.msra.mxu1 %v924_v11  ;;  %v3113_v17 = vrot.slane %v1358_v12, 7 }
 0x238   :  { %2037 = vmatprep.subr.mxu1 %v2178_v0  ;;  %v1368_v56 = vpop.permute.xlu1 %1367 }
 0x239   :  { %2038 = vmatpush3.msra.mxu1 %v923_v46  ;;  %v3134_v22 = vrot.slane %v1368_v56, 2 }
 0x23a   :  { %2039 = vmatprep.subr.mxu1 %v2178_v0  ;;  %v922_v24 = vld [vmem:[#allocation3 + $0x8] sm:$0xff]  ;;  %v921_v32 = vld [vmem:[#allocation3] sm:$0xff]  ;;  %v1360_v52 = vpop.permute.xlu0 %1359 }
 0x23b   :  { %2040 = vmatpush3.msra.mxu1 %v922_v24  ;;  %v3120_v13 = vrot.slane %v1360_v52, 6  ;;  %v1533_v27 = vsel %vm455_vm2, %v3150_v36, %v3134_v22 }
 0x23c   :  { %2041 = vmatprep.subr.mxu1 %v2178_v0  ;;  %v3109_v47 = vpop.permute.xlu1 %1355 }
 0x23d   :  { %2042 = vmatpush3.msra.mxu1 %v921_v32  ;;  %v1420_v1 = vsel %vm455_vm2, %v3113_v17, %v3109_v47  ;;  %v1527_v11 = vsel %vm458_vm5, %v3109_v47, %v1526_v23  ;;  %v1476_v12 = vsel %vm455_vm2, %v3109_v47, %v3145_v51 }
 0x23e   :  { %2044 = vmatmul.mubr.msk.f32.vlgmr.msra.gmra.mxu1 %vm3902_vm1, %v3096_v31  ;;  %2046 = vmatprep.subr.mxu1 %v2106_v39  ;;  %v1362_v43 = vpop.permute.xlu0 %1361  ;;  %v1422_v14 = vsel %vm458_vm5, %v3120_v13, %v1420_v1  ;;  %vm3908_vm1 = vcmask 64512   ;;  %v1576_v1 = vsel %vm455_vm2, %v3148_v60, %v3242_v55 }
 0x23f   :  { %2047 = vmatpush3.msra.mxu1 %v2106_v39  ;;  %2050 = vmatprep.mubr.msk.f32.mxu1 %vm46_vm0, %v1028_v19  ;;  %v3124_v15 = vrot.slane %v1362_v43, 5 }
 0x240   :  { %2048 = vmatprep.subr.mxu1 %v2107_v42  ;;  %v1366_v37 = vpop.permute.xlu1 %1365 }
 0x241   :  { %2049 = vmatpush3.msra.mxu1 %v2107_v42  ;;  %v3136_v58 = vrot.slane %v1366_v37, 3  ;;  %v1424_v53 = vsel %vm461_vm4, %v3124_v15, %v1422_v14 }
 0x242   :  { %2051 = vmatmul.mubr.msk.f32.vlgmr.msra.gmra.mxu1 %vm46_vm0, %v1029_v61  ;;  %2066 = vmatprep.subr.mxu1 %v2106_v39 }
 0x243   :  { %2053 = vmatprep.mubr.msk.f32.mxu1 %vm46_vm0, %v1030_v21  ;;  %2067 = vmatpush3.msra.mxu1 %v2106_v39  ;;  %v1583_v2 = vsel %vm455_vm2, %v3134_v22, %v3136_v58 }
 0x244   :  { %2068 = vmatprep.subr.mxu1 %v2107_v42  ;;  %v1364_v54 = vpop.permute.xlu1 %1363  ;;  %v1584_v10 = vsel %vm458_vm5, %v3150_v36, %v1583_v2 }
 0x245   :  { %2069 = vmatpush3.msra.mxu1 %v2107_v42  ;;  %v3126_v6 = vrot.slane %v1364_v54, 4  ;;  %v3282_v54 = vrot.slane %v3031_v33, 4 }
 0x246   :  { %2054 = vmatmul.mubr.msk.f32.gmra.mxu1 %vm46_vm0, %v1031_v40 }
 0x247   :  { %2070 = vmatprep.mubr.msk.f32.mxu1 %vm46_vm0, %v1230_v5  ;;  %v1426_v3 = vsel %vm464_vm3, %v3126_v6, %v1424_v53  ;;  %v1633_v53 = vsel %vm455_vm2, %v3136_v58, %v3126_v6 }
 0x248   :  { %v1428_v44 = vsel %vm467_vm6, %v3136_v58, %v1426_v3  ;;  %v1577_v3 = vsel %vm458_vm5, %v3145_v51, %v1576_v1  ;;  %v1634_v2 = vsel %vm458_vm5, %v3134_v22, %v1633_v53 }
 0x24a   :  { %2071 = vmatmul.mubr.msk.f32.vlgmr.msra.gmra.mxu1 %vm46_vm0, %v1231_v9  ;;  %v1528_v9 = vsel %vm461_vm4, %v3113_v17, %v1527_v11 }
 0x24b   :  { %2073 = vmatprep.mubr.msk.f32.mxu1 %vm46_vm0, %v1232_v41  ;;  %v1529_v37 = vsel %vm464_vm3, %v3120_v13, %v1528_v9 }
 0x24c   :  { %v1530_v14 = vsel %vm467_vm6, %v3124_v15, %v1529_v37 }
 0x24e   :  { %2074 = vmatmul.mubr.msk.f32.gmra.mxu1 %vm46_vm0, %v1233_v48  ;;  %vm3906_vm0 = vcmask 1046534  }
 0x24f   :  { %v1430_v59 = vsel %vm3906_vm0, %v3134_v22, %v1428_v44  ;;  %vm3907_vm0 = vcmask 1047559  }
 0x250   :  { %v1432_v61 = vsel %vm3907_vm0, %v3150_v36, %v1430_v59  ;;  %v1736_v59 = vsel %vm455_vm2, %v3124_v15, %v3120_v13 }
 0x251   :  { %1460 = vst.msk [vmem:[#allocation3 + $0x10] sm:$0xff] %vm3908_vm1, %v1432_v61  ;;  %vm3909_vm1 = vcmask 1046534   ;;  %v1737_v61 = vsel %vm458_vm5, %v3126_v6, %v1736_v59 }
 0x252   :  { %v1531_v33 = vsel %vm3909_vm1, %v3126_v6, %v1530_v14  ;;  %v1738_v1 = vsel %vm461_vm4, %v3136_v58, %v1737_v61 }
 0x2fe   :  { %v3111_v4 = vpop.f32.mrf.mxu1 }
 0x300   :  { %v2045_v57 = vpop.f32.mrf.mxu1 }
 0x302   :  { %v2052_v29 = vpop.f32.mrf.mxu1 }
 0x303   :  { %1337 = vrot.lane.b32.xlu0 %v2052_v29, %s2179_s0  ;;  %1345 = vrot.lane.b32.xlu1 %v2052_v29, %s2180_s1  ;;  %v3128_v16 = vrot.slane %v2052_v29, 7  ;;  %v1477_v29 = vsel %vm458_vm5, %v3113_v17, %v1476_v12 }
 0x304   :  { %v3122_v25 = vpop.f32.mrf.mxu1 }
 0x305   :  { %v1565_v50 = vsel %vm464_vm3, %v3128_v16, %v3122_v25  ;;  %v1514_v34 = vsel %vm461_vm4, %v3128_v16, %v3122_v25  ;;  %v1463_v45 = vsel %vm458_vm5, %v3128_v16, %v3122_v25  ;;  %v1392_v21 = vsel %vm455_vm2, %v3128_v16, %v3122_v25 }
 0x306   :  { %v3130_v20 = vpop.f32.mrf.mxu1 }
 0x307   :  { %1335 = vrot.lane.b32.xlu0 %v3122_v25, %s2179_s0  ;;  %1343 = vrot.lane.b32.xlu1 %v3122_v25, %s2180_s1  ;;  %v3309_v44 = vrot.slane %v3130_v20, 5 }
 0x308   :  { %v1120_v28 = vpop.f32.mrf.mxu1 }
 0x309   :  { %v3154_v35 = vrot.slane %v1120_v28, 6 }
 0x30a   :  { %v2072_v49 = vpop.f32.mrf.mxu1 }
 0x30b   :  { %1349 = vrot.lane.b32.xlu1 %v3130_v20, %s2180_s1  ;;  %1341 = vrot.lane.b32.xlu0 %v3130_v20, %s2179_s0  ;;  %v3171_v26 = vrot.slane %v2072_v49, 7  ;;  %v3175_v7 = vsel %vm467_vm6, %v3154_v35, %v1565_v50  ;;  %v3187_v18 = vsel %vm464_vm3, %v3154_v35, %v1514_v34  ;;  %v3191_v38 = vsel %vm461_vm4, %v3154_v35, %v1463_v45 }
 0x30c   :  { %v3183_v62 = vpop.f32.mrf.mxu1  ;;  %v3235_v41 = vsel %vm455_vm2, %v3154_v35, %v3128_v16  ;;  %v3239_v48 = vsel %vm458_vm5, %v3154_v35, %v1392_v21  ;;  %v1578_v50 = vsel %vm461_vm4, %v3109_v47, %v1577_v3  ;;  %v1532_v34 = vsel %vm3907_vm0, %v3136_v58, %v1531_v33 }
 0x30d   :  { %v1434_v8 = vsel %vm455_vm2, %v3171_v26, %v3183_v62  ;;  %v1585_v46 = vsel %vm461_vm4, %v3183_v62, %v1584_v10  ;;  %v1534_v24 = vsel %vm458_vm5, %v3183_v62, %v1533_v27  ;;  %v1483_v42 = vsel %vm455_vm2, %v3183_v62, %v3150_v36 }
 0x30e   :  { %v3203_v63 = vpop.f32.mrf.mxu1  ;;  %v1586_v19 = vsel %vm464_vm3, %v3171_v26, %v1585_v46  ;;  %v1535_v39 = vsel %vm461_vm4, %v3171_v26, %v1534_v24  ;;  %v1484_v5 = vsel %vm458_vm5, %v3171_v26, %v1483_v42  ;;  %v1616_v45 = vsel %vm467_vm6, %v3128_v16, %v3122_v25 }
 0x30f   :  { %1339 = vrot.lane.b32.xlu0 %v1120_v28, %s2179_s0  ;;  %1377 = vrot.lane.b32.xlu1 %v2072_v49, %s2179_s0  ;;  %v1635_v10 = vsel %vm461_vm4, %v3150_v36, %v1634_v2  ;;  %v1617_v27 = vsel %vm3909_vm1, %v3154_v35, %v1616_v45  ;;  %v1579_v11 = vsel %vm464_vm3, %v3113_v17, %v1578_v50  ;;  %v3356_v12 = vrot.slane %v3203_v63, 5 }
 0x310   :  { %v1322_v32 = vpop.f32.mrf.mxu1  ;;  %v1636_v46 = vsel %vm464_vm3, %v3183_v62, %v1635_v10  ;;  %v1618_v24 = vsel %vm3907_vm0, %v3309_v44, %v1617_v27  ;;  %v1580_v42 = vsel %vm467_vm6, %v3120_v13, %v1579_v11  ;;  %vm3910_vm0 = vmmov %vm3909_vm1  ;;  %v1739_v3 = vsel %vm464_vm3, %v3134_v22, %v1738_v1 }
 0x311   :  { %v3225_v40 = vrot.slane %v1322_v32, 6  ;;  %v1637_v21 = vsel %vm467_vm6, %v3171_v26, %v1636_v46  ;;  %v1581_v14 = vsel %vm3910_vm0, %v3124_v15, %v1580_v42  ;;  %vm3913_vm11 = vmmov %vm3910_vm0  ;;  %v1740_v50 = vsel %vm467_vm6, %v3150_v36, %v1739_v3 }
 0x312   :  { %v2188_v11 = vmov 0  }
 0x313   :  { %1347 = vrot.lane.b32.xlu0 %v1120_v28, %s2180_s1  ;;  %1383 = vrot.lane.b32.xlu1 %v3183_v62, %s2180_s1  ;;  %v3249_v56 = vsel %vm467_vm6, %v3225_v40, %v1586_v19  ;;  %v3256_v52 = vsel %vm464_vm3, %v3225_v40, %v1535_v39  ;;  %v3260_v30 = vsel %vm461_vm4, %v3225_v40, %v1484_v5 }
 0x314   :  { %v3267_v57 = vsel %vm455_vm2, %v3225_v40, %v3171_v26  ;;  %v3271_v43 = vsel %vm458_vm5, %v3225_v40, %v1434_v8  ;;  %v1478_v28 = vsel %vm461_vm4, %v3120_v13, %v1477_v29  ;;  %v1683_v5 = vsel %vm455_vm2, %v3126_v6, %v3124_v15  ;;  %2105 = vset.pattern.permute.xlu0 %v2188_v11 }
 0x315   :  { %v1479_v23 = vsel %vm464_vm3, %v3124_v15, %v1478_v28  ;;  %v1684_v53 = vsel %vm458_vm5, %v3136_v58, %v1683_v5 }
 0x316   :  { %v1480_v8 = vsel %vm467_vm6, %v3126_v6, %v1479_v23 }
 0x317   :  { %1385 = vrot.lane.b32.xlu0 %v2072_v49, %s2180_s1  ;;  %1381 = vrot.lane.b32.xlu1 %v3203_v63, %s2179_s0  ;;  %v1626_v49 = vsel %vm455_vm2, %v3242_v55, %v3282_v54  ;;  %v1481_v39 = vsel %vm3909_vm1, %v3136_v58, %v1480_v8  ;;  %vm3911_vm1 = vcmask 1047559  }
 0x318   :  { %v1627_v20 = vsel %vm458_vm5, %v3148_v60, %v1626_v49  ;;  %vm3912_vm9 = vmmov %vm3911_vm1  ;;  %v1685_v49 = vsel %vm461_vm4, %v3134_v22, %v1684_v53 }
 0x319   :  { %v1628_v19 = vsel %vm461_vm4, %v3145_v51, %v1627_v20  ;;  %v1482_v29 = vsel %vm3912_vm9, %v3134_v22, %v1481_v39  ;;  %vm3914_vm9 = vmmov %vm3911_vm1 }
 0x31a   :  { %v1629_v9 = vsel %vm464_vm3, %v3109_v47, %v1628_v19  ;;  %v1582_v33 = vsel %vm3914_vm9, %v3126_v6, %v1581_v14 }
 0x31b   :  { %1375 = vrot.lane.b32.xlu0 %v3183_v62, %s2179_s0  ;;  %1389 = vrot.lane.b32.xlu1 %v3203_v63, %s2180_s1  ;;  %v1638_v63 = vsel %vm3913_vm11, %v3225_v40, %v1637_v21  ;;  %v1630_v28 = vsel %vm467_vm6, %v3113_v17, %v1629_v9  ;;  %vm3915_vm11 = vmmov %vm3910_vm0  ;;  %v1516_v21 = vsel %vm467_vm6, %v3309_v44, %v3187_v18 }
 0x31c   :  { %v1639_v2 = vsel %vm3911_vm1, %v3356_v12, %v1638_v63  ;;  %v1631_v23 = vsel %vm3915_vm11, %v3120_v13, %v1630_v28  ;;  %vm3917_vm9 = vmmov %vm3915_vm11 }
 0x31d   :  { %v1741_v10 = vsel %vm3917_vm9, %v3183_v62, %v1740_v50  ;;  %vm3919_vm11 = vmmov %vm3917_vm9 }
 0x31f   :  { %1549 = vrot.lane.b32.xlu1 %v1532_v34, %s2184_s30  ;;  %1379 = vrot.lane.b32.xlu0 %v1322_v32, %s2179_s0  ;;  %v1686_v34 = vsel %vm464_vm3, %v3150_v36, %v1685_v49 }
 0x320   :  { %v1687_v27 = vsel %vm467_vm6, %v3183_v62, %v1686_v34 }
 0x321   :  { %v1688_v8 = vsel %vm3919_vm11, %v3171_v26, %v1687_v27 }
 0x323   :  { %1647 = vrot.lane.b32.xlu1 %v1618_v24, %s2181_s27  ;;  %1387 = vrot.lane.b32.xlu0 %v1322_v32, %s2180_s1  ;;  %v1667_v32 = vsel %vm3910_vm0, %v3128_v16, %v3122_v25  ;;  %vm3916_vm0 = vmmov %vm3911_vm1 }
 0x324   :  { %v1668_v37 = vsel %vm3911_vm1, %v3154_v35, %v1667_v32  ;;  %v1632_v45 = vsel %vm3916_vm0, %v3124_v15, %v1631_v23  ;;  %vm3918_vm1 = vmmov %vm3916_vm0 }
 0x325   :  { %v1742_v20 = vsel %vm3918_vm1, %v3171_v26, %v1741_v10  ;;  %vm3920_vm8 = vmmov %vm3916_vm0 }
 0x326   :  { %v1689_v59 = vsel %vm3920_vm8, %v3225_v40, %v1688_v8  ;;  %vm3921_vm0 = vmmov %vm3917_vm9 }
 0x327   :  { %1697 = vrot.lane.b32.xlu1 %v1668_v37, %s2182_s28  ;;  %1498 = vrot.lane.b32.xlu0 %v1482_v29, %s2176_s19  ;;  %v1567_v26 = vsel %vm3921_vm0, %v3309_v44, %v3175_v7  ;;  %vm3922_vm8 = vmmov %vm3918_vm1  ;;  %v1465_v7 = vsel %vm464_vm3, %v3309_v44, %v3191_v38 }
 0x328   :  { %vm3923_vm9 = vmmov %vm3921_vm0 }
 0x329   :  { %vm3924_vm11 = vmmov %vm3921_vm0 }
 0x32a   :  { %vm3925_vm0 = vmmov %vm3918_vm1 }
 0x32b   :  { %1600 = vrot.lane.b32.xlu0 %v1582_v33, %s2183_s29  ;;  %1653 = vrot.lane.b32.xlu1 %v1639_v2, %s2181_s27 }
 0x32f   :  { %1651 = vrot.lane.b32.xlu0 %v1632_v45, %s2181_s27 }
 0x333   :  { %1757 = vrot.lane.b32.xlu0 %v1742_v20, %s2185_s5 }
 0x337   :  { %1703 = vrot.lane.b32.xlu0 %v1689_v59, %s2182_s28 }
 0x375   :  { %v1338_v46 = vpop.permute.xlu0 %1337  ;;  %v1346_v24 = vpop.permute.xlu1 %1345 }
 0x376   :  { %v3409_v42 = vrot.slane %v1338_v46, 3  ;;  %v3446_v49 = vrot.slane %v1346_v24, 7 }
 0x379   :  { %v1336_v19 = vpop.permute.xlu0 %1335  ;;  %v3405_v39 = vpop.permute.xlu1 %1343 }
 0x37a   :  { %v3407_v61 = vrot.slane %v1336_v19, 4  ;;  %v1406_v45 = vsel %vm455_vm2, %v3446_v49, %v3405_v39 }
 0x37c   :  { %v1568_v5 = vsel %vm3922_vm8, %v3407_v61, %v1567_v26  ;;  %v1517_v32 = vsel %vm3923_vm9, %v3407_v61, %v1516_v21  ;;  %v1466_v14 = vsel %vm467_vm6, %v3407_v61, %v1465_v7  ;;  %v1669_v20 = vsel %vm455_vm2, %v3407_v61, %v3309_v44  ;;  %vm3926_vm8 = vmmov %vm3923_vm9 }
 0x37d   :  { %v1350_v9 = vpop.permute.xlu1 %1349  ;;  %v1342_v37 = vpop.permute.xlu0 %1341  ;;  %1596 = vrot.lane.b32.xlu0 %v1568_v5, %s2183_s29  ;;  %v1518_v29 = vsel %vm3918_vm1, %v3409_v42, %v1517_v32  ;;  %v1467_v33 = vsel %vm3924_vm11, %v3409_v42, %v1466_v14  ;;  %v1670_v32 = vsel %vm458_vm5, %v3409_v42, %v1669_v20  ;;  %v1619_v14 = vsel %vm455_vm2, %v3409_v42, %v3407_v61  ;;  %vm3927_vm9 = vmmov %vm3925_vm0 }
 0x37e   :  { %v3424_v1 = vrot.slane %v1350_v9, 5  ;;  %1545 = vrot.lane.b32.xlu1 %v1518_v29, %s2184_s30  ;;  %v3430_v18 = vrot.slane %v1342_v37, 1  ;;  %vm3928_vm1 = vmmov %vm3926_vm8 }
 0x37f   :  { %vm3929_vm11 = vmmov %vm3925_vm0 }
 0x380   :  { %v1676_v3 = vsel %vm455_vm2, %v3282_v54, %v3424_v1  ;;  %v1469_v38 = vsel %vm455_vm2, %v3405_v39, %v3430_v18 }
 0x381   :  { %v1340_v63 = vpop.permute.xlu0 %1339  ;;  %v1378_v53 = vpop.permute.xlu1 %1377  ;;  %v1677_v50 = vsel %vm458_vm5, %v3242_v55, %v1676_v3  ;;  %v1470_v27 = vsel %vm458_vm5, %v3446_v49, %v1469_v38 }
 0x382   :  { %v3434_v28 = vrot.slane %v1340_v63, 2  ;;  %v1678_v11 = vsel %vm461_vm4, %v3148_v60, %v1677_v50 }
 0x383   :  { %v1679_v29 = vsel %vm464_vm3, %v3145_v51, %v1678_v11 }
 0x384   :  { %v1468_v2 = vsel %vm3925_vm0, %v3434_v28, %v1467_v33  ;;  %v1519_v8 = vsel %vm455_vm2, %v3430_v18, %v3434_v28  ;;  %v1671_v33 = vsel %vm461_vm4, %v3434_v28, %v1670_v32  ;;  %v1569_v20 = vsel %vm455_vm2, %v3434_v28, %v3409_v42  ;;  %vm3930_vm0 = vmmov %vm3928_vm1 }
 0x385   :  { %v1348_v23 = vpop.permute.xlu0 %1347  ;;  %1494 = vrot.lane.b32.xlu0 %v1468_v2, %s2176_s19  ;;  %v3456_v10 = vpop.permute.xlu1 %1383  ;;  %v1520_v9 = vsel %vm458_vm5, %v3405_v39, %v1519_v8  ;;  %v1620_v2 = vsel %vm458_vm5, %v3434_v28, %v1619_v14  ;;  %v1680_v11 = vsel %vm467_vm6, %v3109_v47, %v1679_v29 }
 0x386   :  { %v3451_v34 = vrot.slane %v1348_v23, 6  ;;  %v1681_v29 = vsel %vm3930_vm0, %v3113_v17, %v1680_v11 }
 0x388   :  { %v1471_v59 = vsel %vm461_vm4, %v3451_v34, %v1470_v27  ;;  %v1408_v46 = vsel %vm458_vm5, %v3451_v34, %v1406_v45  ;;  %v1521_v45 = vsel %vm461_vm4, %v3446_v49, %v1520_v9  ;;  %v1729_v27 = vsel %vm455_vm2, %v3424_v1, %v3451_v34 }
 0x389   :  { %v3472_v24 = vpop.permute.xlu0 %1385  ;;  %v1472_v19 = vsel %vm464_vm3, %v3424_v1, %v1471_v59  ;;  %v1410_v26 = vsel %vm461_vm4, %v3424_v1, %v1408_v46  ;;  %v1382_v38 = vpop.permute.xlu1 %1381  ;;  %v1588_v59 = vsel %vm3930_vm0, %v3356_v12, %v3249_v56  ;;  %v1730_v46 = vsel %vm458_vm5, %v3282_v54, %v1729_v27 }
 0x38a   :  { %v1473_v21 = vsel %vm467_vm6, %v3282_v54, %v1472_v19  ;;  %v1412_v5 = vsel %vm464_vm3, %v3282_v54, %v1410_v26  ;;  %v3524_v19 = vrot.slane %v1378_v53, 3  ;;  %v1537_v26 = vsel %vm467_vm6, %v3356_v12, %v3256_v52 }
 0x38b   :  { %v1474_v37 = vsel %vm3926_vm8, %v3242_v55, %v1473_v21  ;;  %v1414_v7 = vsel %vm467_vm6, %v3242_v55, %v1412_v5  ;;  %vm3931_vm8 = vcmask 64512   ;;  %v1672_v21 = vsel %vm464_vm3, %v3430_v18, %v1671_v33 }
 0x38c   :  { %v1475_v63 = vsel %vm3927_vm9, %v3148_v60, %v1474_v37  ;;  %v1416_v3 = vsel %vm3928_vm1, %v3148_v60, %v1414_v7  ;;  %v1621_v56 = vsel %vm461_vm4, %v3430_v18, %v1620_v2  ;;  %vm3932_vm1 = vmmov %vm3930_vm0  ;;  %v1522_v53 = vsel %vm464_vm3, %v3451_v34, %v1521_v45 }
 0x38d   :  { %v1376_v23 = vpop.permute.xlu0 %1375  ;;  %1496 = vrot.lane.b32.xlu1 %v1475_v63, %s2176_s19  ;;  %v1418_v50 = vsel %vm3929_vm11, %v3145_v51, %v1416_v3  ;;  %v1570_v9 = vsel %vm458_vm5, %v3430_v18, %v1569_v20  ;;  %vm3933_vm11 = vmmov %vm3927_vm9  ;;  %v1731_v7 = vsel %vm461_vm4, %v3242_v55, %v1730_v46  ;;  %v1673_v14 = vsel %vm467_vm6, %v3405_v39, %v1672_v21  ;;  %v1390_v3 = vpop.permute.xlu1 %1389 }
 0x38e   :  { %v3514_v8 = vrot.slane %v1376_v23, 4  ;;  %1459 = vst.msk [vmem:[#allocation3 + $0x8] sm:$0xff] %vm3931_vm8, %v1418_v50  ;;  %v1622_v63 = vsel %vm464_vm3, %v3405_v39, %v1621_v56  ;;  %v1523_v33 = vsel %vm467_vm6, %v3424_v1, %v1522_v53  ;;  %v1571_v2 = vsel %vm461_vm4, %v3405_v39, %v1570_v9  ;;  %vm3934_vm8 = vmmov %vm3927_vm9 }
 0x38f   :  { %v3557_v23 = vrot.slane %v1390_v3, 5  ;;  %v1682_v50 = vsel %vm3934_vm8, %v3120_v13, %v1681_v29  ;;  %v1732_v45 = vsel %vm464_vm3, %v3148_v60, %v1731_v7  ;;  %v1572_v46 = vsel %vm464_vm3, %v3446_v49, %v1571_v2 }
 0x390   :  { %v1589_v5 = vsel %vm3927_vm9, %v3514_v8, %v1588_v59  ;;  %v1538_v32 = vsel %vm3932_vm1, %v3514_v8, %v1537_v26  ;;  %vm3935_vm9 = vmmov %vm3930_vm0  ;;  %v1623_v59 = vsel %vm467_vm6, %v3446_v49, %v1622_v63  ;;  %v1733_v26 = vsel %vm467_vm6, %v3145_v51, %v1732_v45 }
 0x391   :  { %v1380_v37 = vpop.permute.xlu0 %1379  ;;  %1602 = vrot.lane.b32.xlu1 %v1589_v5, %s2183_s29  ;;  %v1539_v52 = vsel %vm3933_vm11, %v3524_v19, %v1538_v32  ;;  %v1674_v20 = vsel %vm3935_vm9, %v3446_v49, %v1673_v14  ;;  %vm3936_vm1 = vmmov %vm3930_vm0  ;;  %v3576_v21 = vrot.slane %v1382_v38, 1  ;;  %v1624_v5 = vsel %vm3930_vm0, %v3451_v34, %v1623_v59 }
 0x392   :  { %1551 = vrot.lane.b32.xlu0 %v1539_v52, %s2184_s30  ;;  %v1524_v11 = vsel %vm3936_vm1, %v3282_v54, %v1523_v33  ;;  %vm3937_vm11 = vmmov %vm3934_vm8  ;;  %v3582_v32 = vrot.slane %v1380_v37, 2  ;;  %v1573_v52 = vsel %vm467_vm6, %v3451_v34, %v1572_v46  ;;  %v1486_v38 = vsel %vm464_vm3, %v3356_v12, %v3260_v30 }
 0x393   :  { %v1675_v56 = vsel %vm3937_vm11, %v3451_v34, %v1674_v20  ;;  %v1525_v9 = vsel %vm3934_vm8, %v3242_v55, %v1524_v11  ;;  %vm3938_vm9 = vcmask 130112   ;;  %vm3939_vm1 = vmmov %vm3930_vm0  ;;  %v1797_v29 = vsel %vm458_vm5, %v3356_v12, %v3267_v57 }
 0x394   :  { %v1734_v37 = vsel %vm3939_vm1, %v3109_v47, %v1733_v26  ;;  %v1743_v7 = vsel %vm455_vm2, %v3356_v12, %v3225_v40  ;;  %v1396_v14 = vsel %vm461_vm4, %v3309_v44, %v3239_v48  ;;  %v3606_v30 = vrot.slane %v3472_v24, 7  ;;  %vm3940_vm11 = vmmov %vm3934_vm8 }
 0x395   :  { %v1388_v27 = vpop.permute.xlu0 %1387  ;;  %1701 = vrot.lane.b32.xlu1 %v1682_v50, %s2182_s28  ;;  %v1625_v63 = vsel %vm3940_vm11, %v3424_v1, %v1624_v5  ;;  %v1487_v3 = vsel %vm467_vm6, %v3514_v8, %v1486_v38  ;;  %v1398_v57 = vsel %vm464_vm3, %v3407_v61, %v1396_v14  ;;  %v1574_v40 = vsel %vm3930_vm0, %v3424_v1, %v1573_v52  ;;  %vm3942_vm1 = vmmov %vm3934_vm8 }
 0x396   :  { %1707 = vrot.lane.b32.xlu0 %v3557_v23, %s2182_s28  ;;  %v3614_v33 = vrot.slane %v1388_v27, 6  ;;  %v1490_v48 = vsel %vm455_vm2, %v3456_v10, %v3576_v21  ;;  %v1798_v24 = vsel %vm461_vm4, %v3514_v8, %v1797_v29  ;;  %v1735_v2 = vsel %vm3934_vm8, %v3113_v17, %v1734_v37  ;;  %vm3943_vm11 = vmmov %vm3942_vm1 }
 0x397   :  { %v1744_v50 = vsel %vm458_vm5, %v3514_v8, %v1743_v7  ;;  %v1590_v45 = vsel %vm455_vm2, %v3582_v32, %v3524_v19  ;;  %v1789_v20 = vsel %vm455_vm2, %v3120_v13, %v3113_v17  ;;  %v1400_v59 = vsel %vm467_vm6, %v3409_v42, %v1398_v57  ;;  %vm3944_vm8 = vmmov %vm3942_vm1 }
 0x398   :  { %v1438_v11 = vsel %vm461_vm4, %v3356_v12, %v3271_v43  ;;  %v1575_v46 = vsel %vm3942_vm1, %v3282_v54, %v1574_v40  ;;  %v1799_v5 = vsel %vm464_vm3, %v3524_v19, %v1798_v24  ;;  %v1750_v17 = vsel %vm455_vm2, %v3557_v23, %v3614_v33  ;;  %vm3946_vm1 = vmmov %vm3930_vm0 }
 0x399   :  { %v1499_v53 = vpop.permute.xlu0 %1498  ;;  %1699 = vrot.lane.b32.xlu1 %v1675_v56, %s2182_s28  ;;  %v1491_v56 = vsel %vm458_vm5, %v3606_v30, %v1490_v48  ;;  %v1745_v13 = vsel %vm461_vm4, %v3524_v19, %v1744_v50  ;;  %v1591_v43 = vsel %vm458_vm5, %v3576_v21, %v1590_v45  ;;  %v1440_v38 = vsel %vm464_vm3, %v3514_v8, %v1438_v11 }
 0x39a   :  { %1511 = vst.msk [vmem:[#allocation3 + $0xf] sm:$0xff] %vm3938_vm9, %v1499_v53  ;;  %1547 = vrot.lane.b32.xlu0 %v1525_v9, %s2184_s30  ;;  %vm3941_vm9 = vmmov %vm3930_vm0  ;;  %v1402_v53 = vsel %vm3930_vm0, %v3434_v28, %v1400_v59  ;;  %v1640_v9 = vsel %vm455_vm2, %v3524_v19, %v3514_v8  ;;  %v1448_v37 = vsel %vm455_vm2, %v3606_v30, %v3456_v10  ;;  %vm3948_vm0 = vcmask 60416  }
 0x39b   :  { %v1488_v27 = vsel %vm3941_vm9, %v3524_v19, %v1487_v3  ;;  %v1404_v52 = vsel %vm3944_vm8, %v3430_v18, %v1402_v53  ;;  %v1492_v29 = vsel %vm461_vm4, %v3614_v33, %v1491_v56  ;;  %v1641_v7 = vsel %vm458_vm5, %v3582_v32, %v1640_v9 }
 0x39c   :  { %v1489_v26 = vsel %vm3943_vm11, %v3582_v32, %v1488_v27  ;;  %vm3945_vm9 = vcmask 64512   ;;  %v1442_v14 = vsel %vm467_vm6, %v3524_v19, %v1440_v38  ;;  %v1800_v3 = vsel %vm467_vm6, %v3582_v32, %v1799_v5  ;;  %vm3947_vm11 = vmmov %vm3944_vm8 }
 0x39d   :  { %1649 = vrot.lane.b32.xlu1 %v1625_v63, %s2181_s27  ;;  %1458 = vst.msk [vmem:[#allocation3] sm:$0xff] %vm3945_vm9, %v1404_v52  ;;  %v1450_v63 = vsel %vm458_vm5, %v3614_v33, %v1448_v37  ;;  %v1746_v57 = vsel %vm464_vm3, %v3582_v32, %v1745_v13  ;;  %v1444_v40 = vsel %vm3946_vm1, %v3582_v32, %v1442_v14  ;;  %vm3949_vm8 = vmmov %vm3945_vm9 }
 0x39e   :  { %1755 = vrot.lane.b32.xlu0 %v1735_v2, %s2185_s5  ;;  %v1452_v48 = vsel %vm461_vm4, %v3557_v23, %v1450_v63  ;;  %v1592_v24 = vsel %vm461_vm4, %v3456_v10, %v1591_v43  ;;  %v1540_v2 = vsel %vm455_vm2, %v3576_v21, %v3582_v32  ;;  %v1690_v50 = vsel %vm455_vm2, %v3514_v8, %v3356_v12  ;;  %vm3950_vm9 = vmmov %vm3946_vm1 }
 0x39f   :  { %v1446_v45 = vsel %vm3947_vm11, %v3576_v21, %v1444_v40  ;;  %1462 = vst.msk [vmem:[#allocation3 + $0x20] sm:$0xf] %vm3948_vm0, %v1452_v48  ;;  %v1493_v27 = vsel %vm464_vm3, %v3557_v23, %v1492_v29  ;;  %v1803_v59 = vsel %vm455_vm2, %v3614_v33, %v3606_v30  ;;  %v1642_v11 = vsel %vm461_vm4, %v3576_v21, %v1641_v7  ;;  %vm3951_vm1 = vmmov %vm3947_vm11 }
 0x3a0   :  { %1461 = vst.msk [vmem:[#allocation3 + $0x18] sm:$0xff] %vm3949_vm8, %v1446_v45  ;;  %v1801_v12 = vsel %vm3950_vm9, %v3576_v21, %v1800_v3  ;;  %v1747_v8 = vsel %vm467_vm6, %v3576_v21, %v1746_v57  ;;  %v1541_v56 = vsel %vm458_vm5, %v3456_v10, %v1540_v2  ;;  %v1691_v5 = vsel %vm458_vm5, %v3524_v19, %v1690_v50  ;;  %vm3952_vm11 = vmmov %vm3950_vm9 }
 0x3a1   :  { %1598 = vrot.lane.b32.xlu1 %v1575_v46, %s2183_s29  ;;  %v1790_v46 = vsel %vm458_vm5, %v3124_v15, %v1789_v20  ;;  %v1804_v13 = vsel %vm458_vm5, %v3557_v23, %v1803_v59  ;;  %v1643_v43 = vsel %vm464_vm3, %v3456_v10, %v1642_v11  ;;  %v1692_v15 = vsel %vm461_vm4, %v3582_v32, %v1691_v5  ;;  %vm3953_vm0 = vmmov %vm3951_vm1 }
 0x3a2   :  { %1761 = vrot.lane.b32.xlu0 %v1750_v17, %s2185_s5  ;;  %v1782_v17 = vsel %vm455_vm2, %v3451_v34, %v3446_v49  ;;  %v1802_v20 = vsel %vm3951_vm1, %v3456_v10, %v1801_v12  ;;  %v1748_v19 = vsel %vm3952_vm11, %v3456_v10, %v1747_v8  ;;  %v1791_v34 = vsel %vm461_vm4, %v3126_v6, %v1790_v46 }
 0x3a3   :  { %v1542_v9 = vsel %vm461_vm4, %v3606_v30, %v1541_v56  ;;  %v1722_v32 = vsel %vm455_vm2, %v3309_v44, %v3154_v35  ;;  %v1783_v52 = vsel %vm458_vm5, %v3424_v1, %v1782_v17  ;;  %v1644_v38 = vsel %vm467_vm6, %v3606_v30, %v1643_v43  ;;  %vm3954_vm2 = vmmov %vm3950_vm9 }
 0x3a4   :  { %v1693_v6 = vsel %vm464_vm3, %v3576_v21, %v1692_v15  ;;  %v1723_v37 = vsel %vm458_vm5, %v3407_v61, %v1722_v32  ;;  %v1749_v29 = vsel %vm3953_vm0, %v3606_v30, %v1748_v19  ;;  %v1792_v7 = vsel %vm464_vm3, %v3136_v58, %v1791_v34  ;;  %vm3955_vm8 = vmmov %vm3954_vm2 }
 0x3a5   :  { %1500 = vrot.lane.b32.xlu1 %v1489_v26, %s2176_s19  ;;  %v1593_v26 = vsel %vm464_vm3, %v3606_v30, %v1592_v24  ;;  %v1543_v1 = vsel %vm464_vm3, %v3614_v33, %v1542_v9  ;;  %v1784_v21 = vsel %vm461_vm4, %v3282_v54, %v1783_v52  ;;  %v1645_v14 = vsel %vm3955_vm8, %v3614_v33, %v1644_v38  ;;  %vm3956_vm9 = vmmov %vm3953_vm0 }
 0x3a6   :  { %1502 = vrot.lane.b32.xlu0 %v1493_v27, %s2176_s19  ;;  %v1594_v53 = vsel %vm467_vm6, %v3614_v33, %v1593_v26  ;;  %v1694_v63 = vsel %vm467_vm6, %v3456_v10, %v1693_v6  ;;  %v1724_v58 = vsel %vm461_vm4, %v3409_v42, %v1723_v37  ;;  %v1793_v3 = vsel %vm467_vm6, %v3134_v22, %v1792_v7  ;;  %vm3957_vm1 = vmmov %vm3954_vm2 }
 0x3a7   :  { %v1595_v35 = vsel %vm3954_vm2, %v3557_v23, %v1594_v53  ;;  %v1725_v57 = vsel %vm464_vm3, %v3434_v28, %v1724_v58  ;;  %v1544_v54 = vsel %vm467_vm6, %v3557_v23, %v1543_v1  ;;  %v1785_v40 = vsel %vm464_vm3, %v3242_v55, %v1784_v21  ;;  %vm3958_vm11 = vmmov %vm3957_vm1 }
 0x3a8   :  { %v1646_v10 = vsel %vm3956_vm9, %v3557_v23, %v1645_v14  ;;  %v1695_v48 = vsel %vm3957_vm1, %v3606_v30, %v1694_v63  ;;  %v1794_v22 = vsel %vm3958_vm11, %v3150_v36, %v1793_v3  ;;  %v1726_v24 = vsel %vm467_vm6, %v3430_v18, %v1725_v57  ;;  %vm3959_vm2 = vmmov %vm3953_vm0 }
 0x3a9   :  { %1815 = vrot.lane.b32.xlu1 %v1804_v13, %s2186_s6  ;;  %v1776_v55 = vsel %vm458_vm5, %v3309_v44, %v3235_v41  ;;  %v1786_v2 = vsel %vm467_vm6, %v3148_v60, %v1785_v40  ;;  %v1696_v30 = vsel %vm3953_vm0, %v3614_v33, %v1695_v48  ;;  %v1795_v36 = vsel %vm3959_vm2, %v3183_v62, %v1794_v22  ;;  %vm3960_vm8 = vmmov %vm3957_vm1 }
 0x3aa   :  { %1813 = vrot.lane.b32.xlu0 %v1802_v20, %s2186_s6  ;;  %v1777_v23 = vsel %vm461_vm4, %v3407_v61, %v1776_v55  ;;  %v1727_v50 = vsel %vm3960_vm8, %v3405_v39, %v1726_v24  ;;  %vm3961_vm5 = vmmov %vm3957_vm1  ;;  %vm3968_vm2 = vcmask 261315   ;;  %vm3969_vm8 = vcmask 326916  }
 0x3ab   :  { %v1787_v41 = vsel %vm3961_vm5, %v3145_v51, %v1786_v2  ;;  %v1778_v60 = vsel %vm464_vm3, %v3409_v42, %v1777_v23  ;;  %vm3962_vm4 = vmmov %vm3953_vm0  ;;  %vm3970_vm5 = vcmask 392517  }
 0x3ac   :  { %v1779_v44 = vsel %vm467_vm6, %v3434_v28, %v1778_v60  ;;  %v1728_v61 = vsel %vm3962_vm4, %v3446_v49, %v1727_v50  ;;  %vm3963_vm9 = vmmov %vm3953_vm0  ;;  %v1550_v28 = vpop.permute.xlu1 %1549  ;;  %vm3966_vm6 = vcmask 130113   ;;  %vm3971_vm4 = vcmask 130112  }
 0x3ad   :  { %1759 = vrot.lane.b32.xlu1 %v1749_v29, %s2185_s5  ;;  %v1788_v62 = vsel %vm3963_vm9, %v3109_v47, %v1787_v41  ;;  %v1780_v33 = vsel %vm3957_vm1, %v3430_v18, %v1779_v44  ;;  %vm3964_vm11 = vmmov %vm3953_vm0  ;;  %v63_v47 = vld [vmem:[%s3884_s3] sm:$0xff]  ;;  %v1601_v18 = vpop.permute.xlu0 %1600  ;;  %vm3972_vm9 = vcmask 195712   ;;  %s2189_s3 = smov [#allocation9]  }
 0x3ae   :  { %1604 = vrot.lane.b32.xlu0 %v1595_v35, %s2183_s29  ;;  %v1721_v51 = vsel %vm3964_vm11, %v3128_v16, %v3122_v25  ;;  %vm3965_vm3 = vmmov %vm3953_vm0  ;;  %vm3967_vm0 = vcmask 195714   ;;  %vm3974_vm11 = vcmask 261312   ;;  %s1914_s10 = sshll.u32 %s2189_s3, 4  ;;  %s1915_s10 = int_to_ptr.vmem [resolvable:$true] %s1914_s10 }
 0x3af   :  { %v1781_v42 = vsel %vm3965_vm3, %v3405_v39, %v1780_v33  ;;  %vm3973_vm1 = vmmov %vm3972_vm9  ;;  %s2148_s11 = scalar_lea.vmem %s1915_s10, 256  ;;  %p2153_p11 = scmp.lt.s32.totalorder %s1915_s10, %s1915_s10 }
 0x3b0   :  { %v1648_v45 = vpop.permute.xlu1 %1647  ;;  %vm3975_vm3 = vmmov %vm3974_vm11  ;;  %p2149_p10 = scmp.ne.s32.totalorder %s1915_s10, %s2148_s11  ;;  %p2154_p12 = scmp.lt.s32.totalorder %s2148_s11, %s2148_s11 }
 0x3b1   :  { %1553 = vrot.lane.b32.xlu1 %v1544_v54, %s2184_s30  ;;  %v1652_v49 = vpop.permute.xlu0 %1651 }
 0x3b2   :  { %1655 = vrot.lane.b32.xlu0 %v1646_v10, %s2181_s27  ;;  %p2155_p13 = por %p2154_p12, %p2153_p11 }
 0x3b4   :  { %v1698_v27 = vpop.permute.xlu1 %1697  ;;  %p2156_p0 = pnand %p2155_p13, %p2149_p10 }
 0x3b5   :  { %1705 = vrot.lane.b32.xlu1 %v1696_v30, %s2182_s28  ;;  %v1758_v16 = vpop.permute.xlu0 %1757 }
 0x3b6   :  { %1811 = vrot.lane.b32.xlu0 %v1795_v36, %s2186_s6 }
 0x3b8   :  { %v1654_v12 = vpop.permute.xlu1 %1653 }
 0x3b9   :  { %1753 = vrot.lane.b32.xlu1 %v1728_v61, %s2185_s5  ;;  %v1704_v59 = vpop.permute.xlu0 %1703 }
 0x3ba   :  { %1809 = vrot.lane.b32.xlu0 %v1788_v62, %s2186_s6 }
 0x3bd   :  { %1751 = vrot.lane.b32.xlu1 %v1721_v51, %s2185_s5 }
 0x3be   :  { %1807 = vrot.lane.b32.xlu0 %v1781_v42, %s2186_s6 }
 0x3c1   :  { %1805 = vrot.lane.b32.xlu1 %v3122_v25, %s2186_s6 }
 0x3c2   :  { %928 = vperm.xlu0 %2105, %v63_v47  }
 0x3ef   :  { %v1597_v11 = vpop.permute.xlu0 %1596 }
 0x3f0   :  { %v1546_v8 = vpop.permute.xlu1 %1545 }
 0x3f7   :  { %v1495_v39 = vpop.permute.xlu0 %1494 }
 0x3f8   :  { %1509 = vst.msk [vmem:[#allocation3 - $0x1] sm:$0xfe] %vm3966_vm6, %v1495_v39  ;;  %vm3976_vm6 = vmmov %vm3971_vm4 }
 0x3f9   :  { %1560 = vst.msk [vmem:[#allocation3 - $0x2] sm:$0xfc] %vm3967_vm0, %v1546_v8  ;;  %vm3977_vm0 = vmmov %vm3973_vm1 }
 0x3fa   :  { %1611 = vst.msk [vmem:[#allocation3 - $0x3] sm:$0xf8] %vm3968_vm2, %v1597_v11  ;;  %vm3978_vm2 = vmmov %vm3975_vm3 }
 0x3fb   :  { %1662 = vst.msk [vmem:[#allocation3 - $0x4] sm:$0xf0] %vm3969_vm8, %v1648_v45  ;;  %vm3979_vm8 = vcmask 193664  }
 0x3fc   :  { %1715 = vst.msk [vmem:[#allocation3 - $0x5] sm:$0xe0] %vm3970_vm5, %v1698_v27  ;;  %vm3980_vm5 = vcmask 260288  }
 0x3ff   :  { %v1497_v25 = vpop.permute.xlu1 %1496 }
 0x400   :  { %1510 = vst.msk [vmem:[#allocation3 + $0x7] sm:$0xff] %vm3971_vm4, %v1497_v25  ;;  %vm3982_vm4 = vcmask 518592  }
 0x401   :  { %1562 = vst.msk [vmem:[#allocation3 + $0xe] sm:$0xff] %vm3972_vm9, %v1550_v28 }
 0x403   :  { %v1603_v46 = vpop.permute.xlu1 %1602 }
 0x404   :  { %v1552_v26 = vpop.permute.xlu0 %1551 }
 0x407   :  { %v1702_v56 = vpop.permute.xlu1 %1701 }
 0x408   :  { %v1708_v5 = vpop.permute.xlu0 %1707 }
 0x40b   :  { %v1700_v17 = vpop.permute.xlu1 %1699 }
 0x40c   :  { %v1548_v13 = vpop.permute.xlu0 %1547 }
 0x40d   :  { %1561 = vst.msk [vmem:[#allocation3 + $0x6] sm:$0xff] %vm3973_vm1, %v1548_v13 }
 0x40e   :  { %1613 = vst.msk [vmem:[#allocation3 + $0xd] sm:$0xff] %vm3974_vm11, %v1601_v18 }
 0x40f   :  { %v1650_v43 = vpop.permute.xlu1 %1649 }
 0x410   :  { %v1756_v15 = vpop.permute.xlu0 %1755 }
 0x413   :  { %v1599_v20 = vpop.permute.xlu1 %1598 }
 0x414   :  { %1612 = vst.msk [vmem:[#allocation3 + $0x5] sm:$0xff] %vm3975_vm3, %v1599_v20  ;;  %v1762_v19 = vpop.permute.xlu0 %1761 }
 0x415   :  { %1663 = vst.msk [vmem:[#allocation3 + $0x4] sm:$0xff] %vm745_vm14, %v1650_v43  ;;  %1664 = vst.msk [vmem:[#allocation3 + $0xc] sm:$0xff] %vm745_vm14, %v1652_v49 }
 0x416   :  { %1716 = vst.msk [vmem:[#allocation3 + $0x3] sm:$0xff] %vm800_vm13, %v1700_v17  ;;  %1717 = vst.msk [vmem:[#allocation3 + $0xb] sm:$0xff] %vm800_vm13, %v1702_v56 }
 0x417   :  { %1771 = vst.msk [vmem:[#allocation3 + $0xa] sm:$0xff] %vm857_vm12, %v1756_v15  ;;  %v1501_v34 = vpop.permute.xlu1 %1500 }
 0x418   :  { %1512 = vst.msk [vmem:[#allocation3 + $0x17] sm:$0xff] %vm3976_vm6, %v1501_v34  ;;  %v1503_v53 = vpop.permute.xlu0 %1502 }
 0x419   :  { %1563 = vst.msk [vmem:[#allocation3 + $0x16] sm:$0xff] %vm3977_vm0, %v1552_v26 }
 0x41a   :  { %1513 = vst.msk [vmem:[#allocation3 + $0x1f] sm:$0x1f] %vm587_vm10, %v1503_v53  ;;  %vm3981_vm10 = vcmask 385344  }
 0x41b   :  { %1614 = vst.msk [vmem:[#allocation3 + $0x15] sm:$0xff] %vm3978_vm2, %v1603_v46  ;;  %v1816_v9 = vpop.permute.xlu1 %1815 }
 0x41c   :  { %1665 = vst.msk [vmem:[#allocation3 + $0x14] sm:$0xff] %vm745_vm14, %v1654_v12  ;;  %v1814_v32 = vpop.permute.xlu0 %1813 }
 0x41d   :  { %1718 = vst.msk [vmem:[#allocation3 + $0x13] sm:$0xff] %vm800_vm13, %v1704_v59 }
 0x41e   :  { %1772 = vst.msk [vmem:[#allocation3 + $0x12] sm:$0xff] %vm857_vm12, %v1758_v16 }
 0x41f   :  { %v1760_v52 = vpop.permute.xlu1 %1759 }
 0x420   :  { %v1605_v38 = vpop.permute.xlu0 %1604 }
 0x423   :  { %v1554_v6 = vpop.permute.xlu1 %1553 }
 0x424   :  { %1564 = vst.msk [vmem:[#allocation3 + $0x1e] sm:$0x3f] %vm3979_vm8, %v1554_v6  ;;  %v1656_v37 = vpop.permute.xlu0 %1655 }
 0x425   :  { %1615 = vst.msk [vmem:[#allocation3 + $0x1d] sm:$0x7f] %vm3980_vm5, %v1605_v38 }
 0x426   :  { %1666 = vst.msk [vmem:[#allocation3 + $0x1c] sm:$0xff] %vm745_vm14, %v1656_v37  ;;  %vm3983_vm14 = vcmask 458118  }
 0x427   :  { %1720 = vst.msk [vmem:[#allocation3 + $0x23] sm:$0x1] %vm3981_vm10, %v1708_v5  ;;  %v1706_v29 = vpop.permute.xlu1 %1705 }
 0x428   :  { %1719 = vst.msk [vmem:[#allocation3 + $0x1b] sm:$0xff] %vm800_vm13, %v1706_v29  ;;  %v1812_v7 = vpop.permute.xlu0 %1811  ;;  %vm3984_vm13 = vcmask 1043456  }
 0x429   :  { %1773 = vst.msk [vmem:[#allocation3 + $0x1a] sm:$0xff] %vm857_vm12, %v1760_v52 }
 0x42a   :  { %1774 = vst.msk [vmem:[#allocation3 + $0x22] sm:$0x3] %vm862_vm15, %v1762_v19  ;;  %vm3985_vm15 = vcmask 523719  }
 0x42b   :  { %1826 = vst.msk [vmem:[#allocation3 + $0x11] sm:$0xff] %vm914_vm7, %v1812_v7  ;;  %1827 = vst.msk [vmem:[#allocation3 + $0x19] sm:$0xff] %vm914_vm7, %v1814_v32  ;;  %v1754_v35 = vpop.permute.xlu1 %1753 }
 0x42c   :  { %1828 = vst.msk [vmem:[#allocation3 + $0x21] sm:$0x7] %vm3982_vm4, %v1816_v9  ;;  %v1810_v1 = vpop.permute.xlu0 %1809 }
 0x42d   :  { %1770 = vst.msk [vmem:[#allocation3 + $0x2] sm:$0xff] %vm857_vm12, %v1754_v35  ;;  %vm1009_vm12 = vcmask 523264  }
 0x42e   :  { %1825 = vst.msk [vmem:[#allocation3 + $0x9] sm:$0xff] %vm914_vm7, %v1810_v1 }
 0x42f   :  { %v1752_v21 = vpop.permute.xlu1 %1751 }
 0x430   :  { %1769 = vst.msk [vmem:[#allocation3 - $0x6] sm:$0xc0] %vm3983_vm14, %v1752_v21  ;;  %v1808_v14 = vpop.permute.xlu0 %1807 }
 0x431   :  { %1824 = vst.msk [vmem:[#allocation3 + $0x1] sm:$0xff] %vm914_vm7, %v1808_v14  ;;  %vm3986_vm7 = vcmask 293888  }
 0x432   :  { %v1832_v3 = vld [vmem:[#allocation3 + $0x18] sm:$0xff] }
 0x433   :  { %v1833_v63 = vld [vmem:[#allocation3 + $0x20] sm:$0xf]  ;;  %v1806_v58 = vpop.permute.xlu1 %1805 }
 0x434   :  { %2077 = vmatpush3.msk.msra.mxu0 %vm3984_vm13, %v1833_v63  ;;  %1823 = vst.msk [vmem:[#allocation3 - $0x7] sm:$0x80] %vm3985_vm15, %v1806_v58 }
 0x435   :  { %2078 = vmatprep.subr.mxu0 %v2178_v0  ;;  %v1831_v57 = vld [vmem:[#allocation3 + $0x10] sm:$0xff] }
 0x436   :  { %2079 = vmatpush3.msra.mxu0 %v1832_v3 }
 0x437   :  { %2080 = vmatprep.subr.mxu0 %v2178_v0 }
 0x438   :  { %2081 = vmatpush3.msra.mxu0 %v1831_v57  ;;  %v1830_v54 = vld [vmem:[#allocation3 + $0x8] sm:$0xff] }
 0x439   :  { %2082 = vmatprep.subr.mxu0 %v2178_v0 }
 0x43a   :  { %2083 = vmatpush3.msra.mxu0 %v1830_v54 }
 0x43b   :  { %2084 = vmatprep.subr.mxu0 %v2178_v0  ;;  %v1829_v40 = vld [vmem:[#allocation3] sm:$0xff] }
 0x43c   :  { %2085 = vmatpush3.msra.mxu0 %v1829_v40 }
 0x43d   :  { %v929_v10 = vpop.permute.xlu0 %928  ;;  %2087 = vmatmul.mubr.msk.f32.vlgmr.msra.gmra.mxu0 %vm3986_vm7, %v3096_v31 }
 0x43e   :  { %v1006_v48 = vadd.f32 %v3111_v4, %v929_v10 }
 0x440   :  { %1010 = vst.msk [vmem:[#allocation9] sm:$0xff] %vm1009_vm12, %v1006_v48 }
 0x4fd   :  { %v1903_v22 = vpop.f32.mrf.mxu0 }
 0x4fe   :  { %v1904_v24 = vadd.f32 %v1903_v22, %v929_v10 }
 0x4ff   :  { %v2088_v55 = vpop.f32.mrf.mxu0 }
 0x500   :  { %1908 = vst.msk [vmem:[#allocation9 + $0x8] sm:$0xff] %vm1009_vm12, %v1904_v24 }
 0x501   :  { %2159 = shalt.err (!%p2156_p0)
}
 0x502   :  { %1920 = dma.vmem_to_hbm [thread:$0]  %s1915_s10, 256, %s3885_s4, [#allocation6], %s2175_s18, %s2175_s18, %s2176_s19  }
 0x503   :  { %2172 = dma.done.wait [#allocation6], 256  }
 0x504   :  { %2173 = vsyncadd [#allocation6], 4294967040 }
 0x505   :  { %1924 = vsyncpa [#allocation5], 1 }
 0x506   :  { %1925 = vsyncpa [#allocation8], 1 }
 0x507   :  { %1926 = vsyncpa [#allocation6], 1 }

</bundles_post_ra>
